<compile_context>
chip_gen: v6e
topology: v6e:2x2x1
jax: 0.10.0
libtpu: 0.0.40
codegen_flags: <defaults>
</compile_context>

<pallas_src>
import functools

import jax
import jax.numpy as jnp
from jax.experimental import pallas as pl
from jax.experimental.pallas import tpu as pltpu

WIDTH = 128      # common lane-padded feature width (max hidden dim = 128)
N_LAYERS = 7     # 3 GCN layers + 4 FC layers, packed in order


def _leaky_relu(x, slope=0.01):
    # mul+max (2 VPU ops) instead of mul+cmp+select (3 ops)
    return jnp.maximum(x, slope * x)


def _gcn_mlp_kernel(a_ref, x_ref, p_ref, w_ref, b_ref, out_ref):
    """Eval-mode forward for ONE graph (one grid step, everything in VMEM).

    a_ref  : [1, NP, NP]     f32  normalized adjacency D^-1/2 (A+I) D^-1/2
    x_ref  : [1, NP, 128]    f32  node features, zero-padded to 128 lanes
    p_ref  : [1, 1, NP]      f32  mean-pool row (1/count on valid nodes, 0 pad)
    w_ref  : [7, 128, 128]   f32  packed BN-folded, zero-padded weights
    b_ref  : [8, 128]        f32  packed BN-folded, zero-padded biases
    out_ref: [1, 1, 128]     f32  lane-dense output; lane 0 is the prediction
    """
    a = a_ref[0]                         # [NP, NP]
    h = x_ref[0]                         # [NP, 128]

    # --- 3x (GCNConv + folded BatchNorm + leaky_relu) ---
    for i in range(3):
        hw = jnp.dot(h, w_ref[i], preferred_element_type=jnp.float32)
        hh = jnp.dot(a, hw, preferred_element_type=jnp.float32)
        hh = hh + b_ref[i:i + 1, :]
        h = _leaky_relu(hh)

    # --- global_mean_pool: [1, NP] @ [NP, 128] (pool row is 0 on padded rows) ---
    g = jnp.dot(p_ref[0], h, preferred_element_type=jnp.float32)   # [1, 128]

    # --- 4-layer MLP (dropout = identity in eval mode) ---
    for i in range(3, 7):
        g = jnp.dot(g, w_ref[i], preferred_element_type=jnp.float32)
        g = g + b_ref[i:i + 1, :]
        if i < 6:
            g = _leaky_relu(g)

    out_ref[0] = g                       # lane-dense store; lane 0 is the answer


def init_params(key, in_features):
    """Deterministic synthetic parameters matching the module's shapes
    (unfused, PyTorch-like: GCN weight/bias + BN gamma/beta/running stats)."""
    dims_gcn = [(in_features, 32), (32, 64), (64, 128)]
    dims_fc = [(128, 64), (64, 32), (32, 16), (16, 1)]
    keys = jax.random.split(key, len(dims_gcn) + len(dims_fc))
    params = {}
    for i, (fin, fout) in enumerate(dims_gcn, start=1):
        kw, kb, kg, kbe, km, kv = jax.random.split(keys[i - 1], 6)
        params[f"gcn{i}"] = dict(
            w=jax.random.normal(kw, (fin, fout), jnp.float32) / jnp.sqrt(fin),
            b=0.1 * jax.random.normal(kb, (fout,), jnp.float32),
            gamma=1.0 + 0.1 * jax.random.normal(kg, (fout,), jnp.float32),
            beta=0.1 * jax.random.normal(kbe, (fout,), jnp.float32),
            mean=0.1 * jax.random.normal(km, (fout,), jnp.float32),
            var=jax.random.uniform(kv, (fout,), jnp.float32, 0.5, 1.5),
        )
    for i, (fin, fout) in enumerate(dims_fc, start=1):
        kw, kb = jax.random.split(keys[len(dims_gcn) + i - 1], 2)
        params[f"fc{i}"] = dict(
            w=jax.random.normal(kw, (fin, fout), jnp.float32) / jnp.sqrt(fin),
            b=0.1 * jax.random.normal(kb, (fout,), jnp.float32),
        )
    return params


def pack_params(params, eps=1e-5):
    """Fold eval-mode BatchNorm into the GCN weights/biases and pack all
    7 layers into one [7,128,128] f32 weight slab and one [8,128] f32 bias slab."""
    wp = jnp.zeros((N_LAYERS, WIDTH, WIDTH), jnp.float32)
    bp = jnp.zeros((8, WIDTH), jnp.float32)
    for i in (1, 2, 3):
        p = params[f"gcn{i}"]
        scale = p["gamma"] / jnp.sqrt(p["var"] + eps)
        shift = p["beta"] - p["mean"] * scale
        w_f = p["w"] * scale[None, :]
        b_f = p["b"] * scale + shift
        fin, fout = p["w"].shape
        wp = wp.at[i - 1, :fin, :fout].set(w_f)
        bp = bp.at[i - 1, :fout].set(b_f)
    for i in (1, 2, 3, 4):
        p = params[f"fc{i}"]
        fin, fout = p["w"].shape
        wp = wp.at[2 + i, :fin, :fout].set(p["w"])
        bp = bp.at[2 + i, :fout].set(p["b"])
    return wp, bp


def _vmem_limit_bytes(bytes_needed):
    """Generation-aware scoped-VMEM cap: physical capacity minus 16 MiB headroom
    (=> <=48 MiB on v7x's 64 MiB, up to 112 MiB on v5e/v6e's 128 MiB)."""
    cap = 64 << 20
    try:
        if jax.devices()[0].platform == "tpu":
            cap = pltpu.get_tpu_info().vmem_capacity_bytes
    except Exception:
        pass
    return int(max(min(2 * bytes_needed + (8 << 20), cap - (16 << 20)), 16 << 20))


@functools.partial(jax.jit, static_argnames=("n_graphs", "np_nodes"))
def classic_gcn_forward(x, edge_index, edge_weight, batch,
                        w_packed, b_packed, n_graphs, np_nodes):
    """Glue (plain JAX): build per-graph dense A_hat / features / pool row,
    then run the Pallas kernel with a 'parallel' graph-batch grid axis.

    Assumes `batch` is sorted (PyG convention: nodes of graph g contiguous)
    and every edge connects two nodes of the same graph.
    Note: duplicate edges accumulate (matches weighted GCNConv semantics)."""
    n = x.shape[0]
    x = x.astype(jnp.float32)
    g_dim = n_graphs

    # --- gcn_norm (add_self_loops=True, improved=False, fill_value=1) ---
    src = jnp.concatenate([edge_index[0], jnp.arange(n, dtype=edge_index.dtype)])
    dst = jnp.concatenate([edge_index[1], jnp.arange(n, dtype=edge_index.dtype)])
    w = jnp.concatenate([edge_weight.astype(jnp.float32),
                         jnp.ones((n,), jnp.float32)])
    deg = jnp.zeros((n,), jnp.float32).at[dst].add(w)
    dinv = jnp.where(deg > 0, 1.0 / jnp.sqrt(deg), 0.0)
    w_norm = dinv[src] * w * dinv[dst]

    # --- per-graph local node indices (batch assumed sorted) ---
    counts = jnp.zeros((g_dim,), jnp.int32).at[batch].add(1)              # [G]
    offsets = jnp.concatenate([jnp.zeros((1,), jnp.int32),
                               jnp.cumsum(counts)[:-1]])                  # [G]
    local = jnp.arange(n, dtype=jnp.int32) - offsets[batch]               # [N]

    # --- per-graph dense normalized adjacency, lane-padded to np_nodes ---
    g_edge = batch[dst]
    a3 = jnp.zeros((g_dim, np_nodes, np_nodes), jnp.float32)
    a3 = a3.at[g_edge, local[dst], local[src]].add(w_norm)

    # --- per-graph lane-padded node features ---
    x_pad = jnp.zeros((n, WIDTH), jnp.float32).at[:, :x.shape[1]].set(x)
    x3 = jnp.zeros((g_dim, np_nodes, WIDTH), jnp.float32).at[batch, local].set(x_pad)

    # --- per-graph mean-pool row (exact 1/count in f32, zero on padding) ---
    inv = 1.0 / jnp.maximum(counts.astype(jnp.float32), 1.0)
    p3 = jnp.zeros((g_dim, 1, np_nodes), jnp.float32).at[batch, 0, local].set(inv[batch])

    # --- VMEM budget: double-buffered per-step blocks + resident weights ---
    per_step = (np_nodes * np_nodes + np_nodes * WIDTH + np_nodes + WIDTH) * 4
    resident = (w_packed.size + b_packed.size) * 4
    scratch = 4 * np_nodes * WIDTH * 4
    vmem_limit = _vmem_limit_bytes(2 * per_step + resident + scratch)

    out = pl.pallas_call(
        _gcn_mlp_kernel,
        out_shape=jax.ShapeDtypeStruct((g_dim, 1, WIDTH), jnp.float32),
        grid=(g_dim,),
        in_specs=[
            pl.BlockSpec((1, np_nodes, np_nodes), lambda g: (g, 0, 0)),
            pl.BlockSpec((1, np_nodes, WIDTH), lambda g: (g, 0, 0)),
            pl.BlockSpec((1, 1, np_nodes), lambda g: (g, 0, 0)),
            pl.BlockSpec((N_LAYERS, WIDTH, WIDTH), lambda g: (0, 0, 0)),
            pl.BlockSpec((8, WIDTH), lambda g: (0, 0)),
        ],
        out_specs=pl.BlockSpec((1, 1, WIDTH), lambda g: (g, 0, 0)),
        compiler_params=pltpu.CompilerParams(
            dimension_semantics=("parallel",),
            vmem_limit_bytes=vmem_limit),
    )(a3, x3, p3, w_packed, b_packed)
    return out[:, 0, 0]   # squeeze(1) -> [G]


def _reference_forward(x, edge_index, edge_weight, batch, params, n_graphs,
                       eps=1e-5):
    """Pure-JAX f32 reference (unfused BN, global dense A) for a sanity check."""
    n = x.shape[0]
    src = jnp.concatenate([edge_index[0], jnp.arange(n, dtype=edge_index.dtype)])
    dst = jnp.concatenate([edge_index[1], jnp.arange(n, dtype=edge_index.dtype)])
    w = jnp.concatenate([edge_weight.astype(jnp.float32),
                         jnp.ones((n,), jnp.float32)])
    deg = jnp.zeros((n,), jnp.float32).at[dst].add(w)
    dinv = jnp.where(deg > 0, 1.0 / jnp.sqrt(deg), 0.0)
    a = jnp.zeros((n, n), jnp.float32).at[dst, src].add(dinv[src] * w * dinv[dst])
    h = x.astype(jnp.float32)
    for i in (1, 2, 3):
        p = params[f"gcn{i}"]
        h = a @ (h @ p["w"]) + p["b"][None, :]
        h = (h - p["mean"]) / jnp.sqrt(p["var"] + eps) * p["gamma"] + p["beta"]
        h = jnp.where(h >= 0, h, 0.01 * h)
    onehot = jax.nn.one_hot(batch, n_graphs, dtype=jnp.float32)
    g = (onehot / jnp.maximum(onehot.sum(0), 1.0)[None, :]).T @ h
    for i in (1, 2, 3, 4):
        p = params[f"fc{i}"]
        g = g @ p["w"] + p["b"][None, :]
        if i < 4:
            g = jnp.where(g >= 0, g, 0.01 * g)
    return g[:, 0]


if __name__ == "__main__":
    key = jax.random.PRNGKey(0)
    in_features = 8
    n_nodes = 18           # nodes per graph (module default)
    n_graphs = 2
    N = n_nodes * n_graphs
    NP = ((max(n_nodes, 1) + 127) // 128) * 128   # per-graph padded node count

    k_x, k_w, k_p = jax.random.split(key, 3)
    x = jax.random.normal(k_x, (N, in_features), jnp.float32)

    # ring graph inside each graph (both directions)
    src_list, dst_list = [], []
    for g in range(n_graphs):
        base = g * n_nodes
        for i in range(n_nodes):
            j = (i + 1) % n_nodes
            src_list += [base + i, base + j]
            dst_list += [base + j, base + i]
    edge_index = jnp.array([src_list, dst_list], dtype=jnp.int32)   # [2, E]
    E = edge_index.shape[1]
    edge_weight = jax.random.uniform(k_w, (E,), jnp.float32, 0.5, 1.5)
    batch = jnp.repeat(jnp.arange(n_graphs, dtype=jnp.int32), n_nodes)  # [N]

    params = init_params(k_p, in_features)
    w_packed, b_packed = pack_params(params)

    out = classic_gcn_forward(x, edge_index, edge_weight, batch,
                              w_packed, b_packed, n_graphs, NP)
    out = jax.block_until_ready(out)

    ref = _reference_forward(x, edge_index, edge_weight, batch, params, n_graphs)
    assert out.shape == (n_graphs,)
    # all-f32 path -> tight tolerance vs f32 reference
    assert jnp.allclose(out, ref, atol=1e-3, rtol=1e-3), (out, ref)
    print("KERNEL_OK")
</pallas_src>

<mosaic_0001>
module attributes {stable_mosaic.version = 11 : i64} {
  func.func @_gcn_mlp_kernel(%arg0: i32, %arg1: memref<1x128x128xf32, #tpu.memory_space<vmem>>, %arg2: memref<1x128x128xf32, #tpu.memory_space<vmem>>, %arg3: memref<1x1x128xf32, #tpu.memory_space<vmem>>, %arg4: memref<7x128x128xf32, #tpu.memory_space<vmem>>, %arg5: memref<8x128xf32, #tpu.memory_space<vmem>>, %arg6: memref<1x1x128xf32, #tpu.memory_space<vmem>>) attributes {dimension_semantics = [#tpu.dimension_semantics<parallel>], iteration_bounds = array<i64: 2>, scalar_prefetch = 0 : i64, scratch_operands = 0 : i64, tpu.core_type = #tpu.core_type<tc>, window_params = [{transform_indices = @transform_0, window_bounds = array<i64: 1, 128, 128>}, {transform_indices = @transform_1, window_bounds = array<i64: 1, 128, 128>}, {transform_indices = @transform_2, window_bounds = array<i64: 1, 1, 128>}, {pipeline_mode = #tpu.pipeline_mode<synchronous>, transform_indices = @transform_3, window_bounds = array<i64: 7, 128, 128>}, {pipeline_mode = #tpu.pipeline_mode<synchronous>, transform_indices = @transform_4, window_bounds = array<i64: 8, 128>}, {transform_indices = @transform_5, window_bounds = array<i64: 1, 1, 128>}]} {
    %c0 = arith.constant 0 : index
    %c0_0 = arith.constant 0 : index
    %c0_1 = arith.constant 0 : index
    %0 = vector.load %arg1[%c0, %c0_0, %c0_1] : memref<1x128x128xf32, #tpu.memory_space<vmem>>, vector<1x128x128xf32>
    %1 = vector.shape_cast %0 : vector<1x128x128xf32> to vector<128x128xf32>
    %c0_2 = arith.constant 0 : index
    %c0_3 = arith.constant 0 : index
    %c0_4 = arith.constant 0 : index
    %2 = vector.load %arg2[%c0_2, %c0_3, %c0_4] : memref<1x128x128xf32, #tpu.memory_space<vmem>>, vector<1x128x128xf32>
    %3 = vector.shape_cast %2 : vector<1x128x128xf32> to vector<128x128xf32>
    %c0_5 = arith.constant 0 : index
    %c0_6 = arith.constant 0 : index
    %c0_7 = arith.constant 0 : index
    %4 = vector.load %arg4[%c0_5, %c0_6, %c0_7] : memref<7x128x128xf32, #tpu.memory_space<vmem>>, vector<1x128x128xf32>
    %5 = vector.shape_cast %4 : vector<1x128x128xf32> to vector<128x128xf32>
    %cst = arith.constant dense<0.000000e+00> : vector<128x128xf32>
    %6 = tpu.matmul %3, %5, %cst {dimension_numbers = #tpu.dot_dimension_numbers<[1], [0], [0], [1], [0, 0, 1, 1], [], []>} : vector<128x128xf32>, vector<128x128xf32>, vector<128x128xf32> -> vector<128x128xf32>
    %cst_8 = arith.constant dense<0.000000e+00> : vector<128x128xf32>
    %7 = tpu.matmul %1, %6, %cst_8 {dimension_numbers = #tpu.dot_dimension_numbers<[1], [0], [0], [1], [0, 0, 1, 1], [], []>} : vector<128x128xf32>, vector<128x128xf32>, vector<128x128xf32> -> vector<128x128xf32>
    %c0_9 = arith.constant 0 : index
    %c0_10 = arith.constant 0 : index
    %8 = vector.load %arg5[%c0_9, %c0_10] : memref<8x128xf32, #tpu.memory_space<vmem>>, vector<1x128xf32>
    %9 = vector.broadcast %8 : vector<1x128xf32> to vector<128x128xf32>
    %10 = arith.addf %7, %9 : vector<128x128xf32>
    %cst_11 = arith.constant 0.00999999977 : f32
    %11 = vector.broadcast %cst_11 : f32 to vector<128x128xf32>
    %12 = arith.mulf %11, %10 : vector<128x128xf32>
    %13 = arith.maximumf %10, %12 : vector<128x128xf32>
    %c1 = arith.constant 1 : index
    %c0_12 = arith.constant 0 : index
    %c0_13 = arith.constant 0 : index
    %14 = vector.load %arg4[%c1, %c0_12, %c0_13] : memref<7x128x128xf32, #tpu.memory_space<vmem>>, vector<1x128x128xf32>
    %15 = vector.shape_cast %14 : vector<1x128x128xf32> to vector<128x128xf32>
    %cst_14 = arith.constant dense<0.000000e+00> : vector<128x128xf32>
    %16 = tpu.matmul %13, %15, %cst_14 {dimension_numbers = #tpu.dot_dimension_numbers<[1], [0], [0], [1], [0, 0, 1, 1], [], []>} : vector<128x128xf32>, vector<128x128xf32>, vector<128x128xf32> -> vector<128x128xf32>
    %cst_15 = arith.constant dense<0.000000e+00> : vector<128x128xf32>
    %17 = tpu.matmul %1, %16, %cst_15 {dimension_numbers = #tpu.dot_dimension_numbers<[1], [0], [0], [1], [0, 0, 1, 1], [], []>} : vector<128x128xf32>, vector<128x128xf32>, vector<128x128xf32> -> vector<128x128xf32>
    %c1_16 = arith.constant 1 : index
    %c0_17 = arith.constant 0 : index
    %18 = vector.load %arg5[%c1_16, %c0_17] : memref<8x128xf32, #tpu.memory_space<vmem>>, vector<1x128xf32>
    %19 = vector.broadcast %18 : vector<1x128xf32> to vector<128x128xf32>
    %20 = arith.addf %17, %19 : vector<128x128xf32>
    %cst_18 = arith.constant 0.00999999977 : f32
    %21 = vector.broadcast %cst_18 : f32 to vector<128x128xf32>
    %22 = arith.mulf %21, %20 : vector<128x128xf32>
    %23 = arith.maximumf %20, %22 : vector<128x128xf32>
    %c2 = arith.constant 2 : index
    %c0_19 = arith.constant 0 : index
    %c0_20 = arith.constant 0 : index
    %24 = vector.load %arg4[%c2, %c0_19, %c0_20] : memref<7x128x128xf32, #tpu.memory_space<vmem>>, vector<1x128x128xf32>
    %25 = vector.shape_cast %24 : vector<1x128x128xf32> to vector<128x128xf32>
    %cst_21 = arith.constant dense<0.000000e+00> : vector<128x128xf32>
    %26 = tpu.matmul %23, %25, %cst_21 {dimension_numbers = #tpu.dot_dimension_numbers<[1], [0], [0], [1], [0, 0, 1, 1], [], []>} : vector<128x128xf32>, vector<128x128xf32>, vector<128x128xf32> -> vector<128x128xf32>
    %cst_22 = arith.constant dense<0.000000e+00> : vector<128x128xf32>
    %27 = tpu.matmul %1, %26, %cst_22 {dimension_numbers = #tpu.dot_dimension_numbers<[1], [0], [0], [1], [0, 0, 1, 1], [], []>} : vector<128x128xf32>, vector<128x128xf32>, vector<128x128xf32> -> vector<128x128xf32>
    %c2_23 = arith.constant 2 : index
    %c0_24 = arith.constant 0 : index
    %28 = vector.load %arg5[%c2_23, %c0_24] : memref<8x128xf32, #tpu.memory_space<vmem>>, vector<1x128xf32>
    %29 = vector.broadcast %28 : vector<1x128xf32> to vector<128x128xf32>
    %30 = arith.addf %27, %29 : vector<128x128xf32>
    %cst_25 = arith.constant 0.00999999977 : f32
    %31 = vector.broadcast %cst_25 : f32 to vector<128x128xf32>
    %32 = arith.mulf %31, %30 : vector<128x128xf32>
    %33 = arith.maximumf %30, %32 : vector<128x128xf32>
    %c0_26 = arith.constant 0 : index
    %c0_27 = arith.constant 0 : index
    %c0_28 = arith.constant 0 : index
    %34 = vector.load %arg3[%c0_26, %c0_27, %c0_28] : memref<1x1x128xf32, #tpu.memory_space<vmem>>, vector<1x1x128xf32>
    %35 = vector.shape_cast %34 : vector<1x1x128xf32> to vector<1x128xf32>
    %cst_29 = arith.constant dense<0.000000e+00> : vector<1x128xf32>
    %36 = tpu.matmul %35, %33, %cst_29 {dimension_numbers = #tpu.dot_dimension_numbers<[1], [0], [0], [1], [0, 0, 1, 1], [], []>} : vector<1x128xf32>, vector<128x128xf32>, vector<1x128xf32> -> vector<1x128xf32>
    %c3 = arith.constant 3 : index
    %c0_30 = arith.constant 0 : index
    %c0_31 = arith.constant 0 : index
    %37 = vector.load %arg4[%c3, %c0_30, %c0_31] : memref<7x128x128xf32, #tpu.memory_space<vmem>>, vector<1x128x128xf32>
    %38 = vector.shape_cast %37 : vector<1x128x128xf32> to vector<128x128xf32>
    %cst_32 = arith.constant dense<0.000000e+00> : vector<1x128xf32>
    %39 = tpu.matmul %36, %38, %cst_32 {dimension_numbers = #tpu.dot_dimension_numbers<[1], [0], [0], [1], [0, 0, 1, 1], [], []>} : vector<1x128xf32>, vector<128x128xf32>, vector<1x128xf32> -> vector<1x128xf32>
    %c3_33 = arith.constant 3 : index
    %c0_34 = arith.constant 0 : index
    %40 = vector.load %arg5[%c3_33, %c0_34] : memref<8x128xf32, #tpu.memory_space<vmem>>, vector<1x128xf32>
    %41 = arith.addf %39, %40 : vector<1x128xf32>
    %cst_35 = arith.constant 0.00999999977 : f32
    %42 = vector.broadcast %cst_35 : f32 to vector<1x128xf32>
    %43 = arith.mulf %42, %41 : vector<1x128xf32>
    %44 = arith.maximumf %41, %43 : vector<1x128xf32>
    %c4 = arith.constant 4 : index
    %c0_36 = arith.constant 0 : index
    %c0_37 = arith.constant 0 : index
    %45 = vector.load %arg4[%c4, %c0_36, %c0_37] : memref<7x128x128xf32, #tpu.memory_space<vmem>>, vector<1x128x128xf32>
    %46 = vector.shape_cast %45 : vector<1x128x128xf32> to vector<128x128xf32>
    %cst_38 = arith.constant dense<0.000000e+00> : vector<1x128xf32>
    %47 = tpu.matmul %44, %46, %cst_38 {dimension_numbers = #tpu.dot_dimension_numbers<[1], [0], [0], [1], [0, 0, 1, 1], [], []>} : vector<1x128xf32>, vector<128x128xf32>, vector<1x128xf32> -> vector<1x128xf32>
    %c4_39 = arith.constant 4 : index
    %c0_40 = arith.constant 0 : index
    %48 = vector.load %arg5[%c4_39, %c0_40] : memref<8x128xf32, #tpu.memory_space<vmem>>, vector<1x128xf32>
    %49 = arith.addf %47, %48 : vector<1x128xf32>
    %cst_41 = arith.constant 0.00999999977 : f32
    %50 = vector.broadcast %cst_41 : f32 to vector<1x128xf32>
    %51 = arith.mulf %50, %49 : vector<1x128xf32>
    %52 = arith.maximumf %49, %51 : vector<1x128xf32>
    %c5 = arith.constant 5 : index
    %c0_42 = arith.constant 0 : index
    %c0_43 = arith.constant 0 : index
    %53 = vector.load %arg4[%c5, %c0_42, %c0_43] : memref<7x128x128xf32, #tpu.memory_space<vmem>>, vector<1x128x128xf32>
    %54 = vector.shape_cast %53 : vector<1x128x128xf32> to vector<128x128xf32>
    %cst_44 = arith.constant dense<0.000000e+00> : vector<1x128xf32>
    %55 = tpu.matmul %52, %54, %cst_44 {dimension_numbers = #tpu.dot_dimension_numbers<[1], [0], [0], [1], [0, 0, 1, 1], [], []>} : vector<1x128xf32>, vector<128x128xf32>, vector<1x128xf32> -> vector<1x128xf32>
    %c5_45 = arith.constant 5 : index
    %c0_46 = arith.constant 0 : index
    %56 = vector.load %arg5[%c5_45, %c0_46] : memref<8x128xf32, #tpu.memory_space<vmem>>, vector<1x128xf32>
    %57 = arith.addf %55, %56 : vector<1x128xf32>
    %cst_47 = arith.constant 0.00999999977 : f32
    %58 = vector.broadcast %cst_47 : f32 to vector<1x128xf32>
    %59 = arith.mulf %58, %57 : vector<1x128xf32>
    %60 = arith.maximumf %57, %59 : vector<1x128xf32>
    %c6 = arith.constant 6 : index
    %c0_48 = arith.constant 0 : index
    %c0_49 = arith.constant 0 : index
    %61 = vector.load %arg4[%c6, %c0_48, %c0_49] : memref<7x128x128xf32, #tpu.memory_space<vmem>>, vector<1x128x128xf32>
    %62 = vector.shape_cast %61 : vector<1x128x128xf32> to vector<128x128xf32>
    %cst_50 = arith.constant dense<0.000000e+00> : vector<1x128xf32>
    %63 = tpu.matmul %60, %62, %cst_50 {dimension_numbers = #tpu.dot_dimension_numbers<[1], [0], [0], [1], [0, 0, 1, 1], [], []>} : vector<1x128xf32>, vector<128x128xf32>, vector<1x128xf32> -> vector<1x128xf32>
    %c6_51 = arith.constant 6 : index
    %c0_52 = arith.constant 0 : index
    %64 = vector.load %arg5[%c6_51, %c0_52] : memref<8x128xf32, #tpu.memory_space<vmem>>, vector<1x128xf32>
    %65 = arith.addf %63, %64 : vector<1x128xf32>
    %c0_53 = arith.constant 0 : index
    %c0_54 = arith.constant 0 : index
    %c0_55 = arith.constant 0 : index
    %66 = vector.load %arg6[%c0_53, %c0_54, %c0_55] : memref<1x1x128xf32, #tpu.memory_space<vmem>>, vector<1x1x128xf32>
    %67 = vector.shape_cast %66 : vector<1x1x128xf32> to vector<1x128xf32>
    %68 = vector.shape_cast %65 : vector<1x128xf32> to vector<1x1x128xf32>
    tpu.vector_store %arg6[%c0_53, %c0_54, %c0_55], %68 {strides = array<i32>} : memref<1x1x128xf32, #tpu.memory_space<vmem>>, vector<1x1x128xf32>,
    return
  }
  func.func @transform_0(%arg0: i32) -> (i32, i32, i32) {
    %c0_i32 = arith.constant 0 : i32
    %c0_i32_0 = arith.constant 0 : i32
    %c0_i32_1 = arith.constant 0 : i32
    return %arg0, %c0_i32, %c0_i32_0 : i32, i32, i32
  }
  func.func @transform_1(%arg0: i32) -> (i32, i32, i32) {
    %c0_i32 = arith.constant 0 : i32
    %c0_i32_0 = arith.constant 0 : i32
    %c0_i32_1 = arith.constant 0 : i32
    return %arg0, %c0_i32, %c0_i32_0 : i32, i32, i32
  }
  func.func @transform_2(%arg0: i32) -> (i32, i32, i32) {
    %c0_i32 = arith.constant 0 : i32
    %c0_i32_0 = arith.constant 0 : i32
    %c0_i32_1 = arith.constant 0 : i32
    return %arg0, %c0_i32, %c0_i32_0 : i32, i32, i32
  }
  func.func @transform_3(%arg0: i32) -> (i32, i32, i32) {
    %c0_i32 = arith.constant 0 : i32
    %c0_i32_0 = arith.constant 0 : i32
    %c0_i32_1 = arith.constant 0 : i32
    %c0_i32_2 = arith.constant 0 : i32
    return %c0_i32, %c0_i32_0, %c0_i32_1 : i32, i32, i32
  }
  func.func @transform_4(%arg0: i32) -> (i32, i32) {
    %c0_i32 = arith.constant 0 : i32
    %c0_i32_0 = arith.constant 0 : i32
    %c0_i32_1 = arith.constant 0 : i32
    return %c0_i32, %c0_i32_0 : i32, i32
  }
  func.func @transform_5(%arg0: i32) -> (i32, i32, i32) {
    %c0_i32 = arith.constant 0 : i32
    %c0_i32_0 = arith.constant 0 : i32
    %c0_i32_1 = arith.constant 0 : i32
    return %arg0, %c0_i32, %c0_i32_0 : i32, i32, i32
  }
}

</mosaic_0001>

<bundles_post_ra>
// kernel: classic_gcn_forward.1
= control target key start
LH: loop header
LB: loop body
LE: loop exit
PB: predicated region body
PF: predicated region fallthrough
CT: control target
= control target key end

     0   :  { %s2766_s18 = smov 0   ;;  %s3406_s0 = inlined_call_operand.vmem [shape: f32[2,128,128], index: 0, kind: input, shape index: {}]   ;;  %s3407_s1 = inlined_call_operand.vmem [shape: f32[2,128,128], index: 1, kind: input, shape index: {}]   ;;  %s3408_s2 = inlined_call_operand.vmem [shape: f32[2,1,128], index: 2, kind: input, shape index: {}]   ;;  %s3409_s3 = inlined_call_operand.vmem [shape: f32[7,128,128], index: 3, kind: input, shape index: {}]   ;;  %s3410_s4 = inlined_call_operand.vmem [shape: f32[8,128], index: 4, kind: input, shape index: {}]   ;;  %s3411_s5 = inlined_call_operand.vmem [shape: f32[2,1,128], index: 5, kind: output, shape index: {}]  }
   0x1 LB: > { %s1816_s19 = sadd.s32 4294967295, %s2732_s18   ;;  %p1820_p0 = scmp.ge.s32.totalorder %s2732_s18, 1  ;;  %s2732_s18 = sphi %s2766_s18, %s15_s18  }
   0x2   : > { %p205_p1 = scmp.lt.s32.totalorder %s2732_s18, 3 }
   0x4   : > { %p206_p2 = pnand %p1820_p0, %p205_p1 }
   0x5   : > { %p239_p3 = scmp.lt.s32.totalorder (!%p206_p2), %s1816_s19, 1 }
   0x6   : > { %209 = sbr.rel (%p206_p2) target bundleno = 2451 (0x993), region = 40 }
   0xb   : > { %v302_v0 = vld [vmem:[%s3409_s3 + $0x78] sm:$0xff]  ;;  %v301_v1 = vld [vmem:[%s3409_s3 + $0x70] sm:$0xff]  ;;  %v300_v2 = vld [vmem:[%s3409_s3 + $0x68] sm:$0xff]  ;;  %s3413_s19 = smov (!%p239_p3, %s1816_s19), 1  ;;  %vm2735_vm0 = vmmov 0  }
   0xc   : > { %2205 = vmatprep.subr.mxu0 %v302_v0  ;;  %v299_v3 = vld [vmem:[%s3409_s3 + $0x60] sm:$0xff]  ;;  %s1926_s28 = sshll.u32 %s3413_s19, 7  ;;  %v298_v4 = vld [vmem:[%s3409_s3 + $0x58] sm:$0xff]  ;;  %v297_v6 = vld [vmem:[%s3409_s3 + $0x50] sm:$0xff]  ;;  %s251_s23 = scalar_lea.vmem %s3408_s2, %s3413_s19 }
   0xd   : > { %2206 = vmatpush3.msra.mxu0 %v302_v0  ;;  %s2794_s6 = scalar_lea.vmem %s3407_s1, %s1926_s28  ;;  %v296_v7 = vld [vmem:[%s3409_s3 + $0x48] sm:$0xff]  ;;  %v295_v8 = vld [vmem:[%s3409_s3 + $0x40] sm:$0xff]  ;;  %v294_v9 = vld [vmem:[%s3409_s3 + $0x38] sm:$0xff]  ;;  %s2853_s12 = scalar_lea.vmem %s3406_s0, %s1926_s28 }
   0xe   : > { %2207 = vmatprep.subr.mxu0 %v301_v1  ;;  %v271_v5 = vld [vmem:[%s2794_s6] sm:$0xff]  ;;  %v293_v10 = vld [vmem:[%s3409_s3 + $0x30] sm:$0xff]  ;;  %v292_v11 = vld [vmem:[%s3409_s3 + $0x28] sm:$0xff]  ;;  %s254_s17 = scalar_lea.vmem %s3411_s5, %s3413_s19 }
   0xf   : > { %2208 = vmatpush3.msra.mxu0 %v301_v1  ;;  %2237 = vmatprep.mubr.f32.mxu0 %v271_v5  ;;  %v291_v12 = vld [vmem:[%s3409_s3 + $0x20] sm:$0xff]  ;;  %v290_v13 = vld [vmem:[%s3409_s3 + $0x18] sm:$0xff]  ;;  %v289_v14 = vld [vmem:[%s3409_s3 + $0x10] sm:$0xff] }
  0x10   : > { %2209 = vmatprep.subr.mxu0 %v300_v2  ;;  %v288_v15 = vld [vmem:[%s3409_s3 + $0x8] sm:$0xff]  ;;  %v287_v16 = vld [vmem:[%s3409_s3] sm:$0xff]  ;;  %v273_v18 = vld [vmem:[%s2794_s6 + $0x10] sm:$0xff] }
  0x11   : > { %2210 = vmatpush3.msra.mxu0 %v300_v2  ;;  %v272_v17 = vld [vmem:[%s2794_s6 + $0x8] sm:$0xff]  ;;  %v274_v19 = vld [vmem:[%s2794_s6 + $0x18] sm:$0xff]  ;;  %v275_v20 = vld [vmem:[%s2794_s6 + $0x20] sm:$0xff] }
  0x12   : > { %2211 = vmatprep.subr.mxu0 %v299_v3  ;;  %v276_v21 = vld [vmem:[%s2794_s6 + $0x28] sm:$0xff]  ;;  %v277_v22 = vld [vmem:[%s2794_s6 + $0x30] sm:$0xff]  ;;  %v278_v23 = vld [vmem:[%s2794_s6 + $0x38] sm:$0xff] }
  0x13   : > { %2212 = vmatpush3.msra.mxu0 %v299_v3  ;;  %v279_v24 = vld [vmem:[%s2794_s6 + $0x40] sm:$0xff]  ;;  %v280_v25 = vld [vmem:[%s2794_s6 + $0x48] sm:$0xff]  ;;  %v281_v26 = vld [vmem:[%s2794_s6 + $0x50] sm:$0xff] }
  0x14   : > { %2213 = vmatprep.subr.mxu0 %v298_v4  ;;  %v282_v27 = vld [vmem:[%s2794_s6 + $0x58] sm:$0xff]  ;;  %v283_v28 = vld [vmem:[%s2794_s6 + $0x60] sm:$0xff]  ;;  %v284_v29 = vld [vmem:[%s2794_s6 + $0x68] sm:$0xff] }
  0x15   : > { %2214 = vmatpush3.msra.mxu0 %v298_v4  ;;  %v285_v30 = vld [vmem:[%s2794_s6 + $0x70] sm:$0xff]  ;;  %v286_v31 = vld [vmem:[%s2794_s6 + $0x78] sm:$0xff]  ;;  %v2856_v32 = vld [vmem:[%s2853_s12] sm:$0xff] }
  0x16   : > { %2215 = vmatprep.subr.mxu0 %v297_v6  ;;  %2293 = vmatprep.mubr.f32.mxu1 %v2856_v32  ;;  %v1841_v33 = vld [vmem:[%s3409_s3 + $0xf8] sm:$0xff]  ;;  %v1840_v34 = vld [vmem:[%s3409_s3 + $0xf0] sm:$0xff]  ;;  %v1839_v35 = vld [vmem:[%s3409_s3 + $0xe8] sm:$0xff] }
  0x17   : > { %2216 = vmatpush3.msra.mxu0 %v297_v6  ;;  %v1838_v36 = vld [vmem:[%s3409_s3 + $0xe0] sm:$0xff]  ;;  %v1837_v37 = vld [vmem:[%s3409_s3 + $0xd8] sm:$0xff]  ;;  %v1836_v38 = vld [vmem:[%s3409_s3 + $0xd0] sm:$0xff] }
  0x18   : > { %2217 = vmatprep.subr.mxu0 %v296_v7  ;;  %v1835_v39 = vld [vmem:[%s3409_s3 + $0xc8] sm:$0xff]  ;;  %v1834_v40 = vld [vmem:[%s3409_s3 + $0xc0] sm:$0xff]  ;;  %v1833_v41 = vld [vmem:[%s3409_s3 + $0xb8] sm:$0xff] }
  0x19   : > { %2218 = vmatpush3.msra.mxu0 %v296_v7  ;;  %v1832_v42 = vld [vmem:[%s3409_s3 + $0xb0] sm:$0xff]  ;;  %v1831_v43 = vld [vmem:[%s3409_s3 + $0xa8] sm:$0xff]  ;;  %v2901_v62 = vld [vmem:[%s2853_s12 + $0x18] sm:$0xff] }
  0x1a   : > { %2219 = vmatprep.subr.mxu0 %v295_v8  ;;  %v2893_v60 = vld [vmem:[%s2853_s12 + $0x8] sm:$0xff]  ;;  %v2896_v61 = vld [vmem:[%s2853_s12 + $0x10] sm:$0xff]  ;;  %v2904_v63 = vld [vmem:[%s2853_s12 + $0x20] sm:$0xff] }
  0x1b   : > { %2220 = vmatpush3.msra.mxu0 %v295_v8  ;;  %v2909_v0 = vld [vmem:[%s2853_s12 + $0x28] sm:$0xff]  ;;  %v2912_v1 = vld [vmem:[%s2853_s12 + $0x30] sm:$0xff]  ;;  %v2917_v2 = vld [vmem:[%s2853_s12 + $0x38] sm:$0xff] }
  0x1c   : > { %2221 = vmatprep.subr.mxu0 %v294_v9  ;;  %v2920_v3 = vld [vmem:[%s2853_s12 + $0x40] sm:$0xff]  ;;  %v2925_v4 = vld [vmem:[%s2853_s12 + $0x48] sm:$0xff]  ;;  %v2928_v5 = vld [vmem:[%s2853_s12 + $0x50] sm:$0xff] }
  0x1d   : > { %2222 = vmatpush3.msra.mxu0 %v294_v9  ;;  %v2933_v6 = vld [vmem:[%s2853_s12 + $0x58] sm:$0xff]  ;;  %v2936_v7 = vld [vmem:[%s2853_s12 + $0x60] sm:$0xff]  ;;  %v2941_v8 = vld [vmem:[%s2853_s12 + $0x68] sm:$0xff] }
  0x1e   : > { %2223 = vmatprep.subr.mxu0 %v293_v10  ;;  %v2944_v9 = vld [vmem:[%s2853_s12 + $0x70] sm:$0xff] }
  0x1f   : > { %2224 = vmatpush3.msra.mxu0 %v293_v10  ;;  %v2949_v10 = vld [vmem:[%s2853_s12 + $0x78] sm:$0xff] }
  0x20   : > { %2225 = vmatprep.subr.mxu0 %v292_v11 }
  0x21   : > { %2226 = vmatpush3.msra.mxu0 %v292_v11  ;;  %v1830_v11 = vld [vmem:[%s3409_s3 + $0xa0] sm:$0xff] }
  0x22   : > { %2227 = vmatprep.subr.mxu0 %v291_v12 }
  0x23   : > { %2228 = vmatpush3.msra.mxu0 %v291_v12  ;;  %v1829_v12 = vld [vmem:[%s3409_s3 + $0x98] sm:$0xff] }
  0x24   : > { %2229 = vmatprep.subr.mxu0 %v290_v13 }
  0x25   : > { %2230 = vmatpush3.msra.mxu0 %v290_v13  ;;  %v1828_v13 = vld [vmem:[%s3409_s3 + $0x90] sm:$0xff] }
  0x26   : > { %2231 = vmatprep.subr.mxu0 %v289_v14 }
  0x27   : > { %2232 = vmatpush3.msra.mxu0 %v289_v14  ;;  %v1827_v14 = vld [vmem:[%s3409_s3 + $0x88] sm:$0xff] }
  0x28   : > { %2233 = vmatprep.subr.mxu0 %v288_v15 }
  0x29   : > { %2234 = vmatpush3.msra.mxu0 %v288_v15  ;;  %v1826_v15 = vld [vmem:[%s3409_s3 + $0x80] sm:$0xff] }
  0x2a   : > { %2235 = vmatprep.subr.mxu0 %v287_v16 }
  0x2b   : > { %2236 = vmatpush3.msra.mxu0 %v287_v16  ;;  %v2971_v16 = vld [vmem:[%s3410_s4] ss:$0 sm:$0xff] }
  0x2c   : > { %2238 = vmatmul.mubr.f32.vlgmr.msra.gmra.mxu0 %v272_v17  ;;  %2317 = vmatprep.subr.mxu0 %v1841_v33 }
  0x2d   : > { %2240 = vmatprep.mubr.f32.mxu0 %v273_v18  ;;  %2318 = vmatpush3.msra.mxu0 %v1841_v33 }
  0x2e   : > { %2319 = vmatprep.subr.mxu0 %v1840_v34 }
  0x2f   : > { %2320 = vmatpush3.msra.mxu0 %v1840_v34 }
  0x30   : > { %2241 = vmatmul.mubr.f32.gmra.mxu0 %v274_v19  ;;  %2321 = vmatprep.subr.mxu0 %v1839_v35 }
  0x31   : > { %2243 = vmatprep.mubr.f32.mxu0 %v275_v20  ;;  %2322 = vmatpush3.msra.mxu0 %v1839_v35 }
  0x32   : > { %2323 = vmatprep.subr.mxu0 %v1838_v36 }
  0x33   : > { %2324 = vmatpush3.msra.mxu0 %v1838_v36 }
  0x34   : > { %2244 = vmatmul.mubr.f32.gmra.mxu0 %v276_v21  ;;  %2325 = vmatprep.subr.mxu0 %v1837_v37 }
  0x35   : > { %2246 = vmatprep.mubr.f32.mxu0 %v277_v22  ;;  %2326 = vmatpush3.msra.mxu0 %v1837_v37 }
  0x36   : > { %2327 = vmatprep.subr.mxu0 %v1836_v38 }
  0x37   : > { %2328 = vmatpush3.msra.mxu0 %v1836_v38 }
  0x38   : > { %2247 = vmatmul.mubr.f32.gmra.mxu0 %v278_v23  ;;  %2329 = vmatprep.subr.mxu0 %v1835_v39 }
  0x39   : > { %2249 = vmatprep.mubr.f32.mxu0 %v279_v24  ;;  %2330 = vmatpush3.msra.mxu0 %v1835_v39 }
  0x3a   : > { %2331 = vmatprep.subr.mxu0 %v1834_v40 }
  0x3b   : > { %2332 = vmatpush3.msra.mxu0 %v1834_v40 }
  0x3c   : > { %2250 = vmatmul.mubr.f32.gmra.mxu0 %v280_v25  ;;  %2333 = vmatprep.subr.mxu0 %v1833_v41 }
  0x3d   : > { %2252 = vmatprep.mubr.f32.mxu0 %v281_v26  ;;  %2334 = vmatpush3.msra.mxu0 %v1833_v41 }
  0x3e   : > { %2335 = vmatprep.subr.mxu0 %v1832_v42 }
  0x3f   : > { %2336 = vmatpush3.msra.mxu0 %v1832_v42 }
  0x40   : > { %2253 = vmatmul.mubr.f32.gmra.mxu0 %v282_v27  ;;  %2337 = vmatprep.subr.mxu0 %v1831_v43 }
  0x41   : > { %2255 = vmatprep.mubr.f32.mxu0 %v283_v28  ;;  %2338 = vmatpush3.msra.mxu0 %v1831_v43 }
  0x42   : > { %2339 = vmatprep.subr.mxu0 %v1830_v11 }
  0x43   : > { %2340 = vmatpush3.msra.mxu0 %v1830_v11 }
  0x44   : > { %2256 = vmatmul.mubr.f32.gmra.mxu0 %v284_v29  ;;  %2341 = vmatprep.subr.mxu0 %v1829_v12 }
  0x45   : > { %2258 = vmatprep.mubr.f32.mxu0 %v285_v30  ;;  %2342 = vmatpush3.msra.mxu0 %v1829_v12 }
  0x46   : > { %2343 = vmatprep.subr.mxu0 %v1828_v13 }
  0x47   : > { %2344 = vmatpush3.msra.mxu0 %v1828_v13 }
  0x48   : > { %2259 = vmatmul.mubr.f32.gmra.mxu0 %v286_v31  ;;  %2345 = vmatprep.subr.mxu0 %v1827_v14 }
  0x49   : > { %2346 = vmatpush3.msra.mxu0 %v1827_v14 }
  0x4a   : > { %2347 = vmatprep.subr.mxu0 %v1826_v15 }
  0x4b   : > { %2348 = vmatpush3.msra.mxu0 %v1826_v15 }
  0xec   : > { %v2239_v44 = vpop.f32.mrf.mxu0 }
  0xee   : > { %v369_v45 = vpop.f32.mrf.mxu0 }
  0xf0   : > { %v2242_v46 = vpop.f32.mrf.mxu0 }
  0xf2   : > { %v379_v47 = vpop.f32.mrf.mxu0 }
  0xf4   : > { %v2245_v48 = vpop.f32.mrf.mxu0 }
  0xf6   : > { %v389_v49 = vpop.f32.mrf.mxu0 }
  0xf8   : > { %v2248_v50 = vpop.f32.mrf.mxu0 }
  0xfa   : > { %v399_v51 = vpop.f32.mrf.mxu0 }
  0xfc   : > { %v2251_v52 = vpop.f32.mrf.mxu0 }
  0xfe   : > { %v409_v53 = vpop.f32.mrf.mxu0 }
 0x100   : > { %v2254_v54 = vpop.f32.mrf.mxu0 }
 0x102   : > { %v419_v55 = vpop.f32.mrf.mxu0 }
 0x104   : > { %v2257_v56 = vpop.f32.mrf.mxu0 }
 0x106   : > { %v429_v57 = vpop.f32.mrf.mxu0 }
 0x108   : > { %v2260_v58 = vpop.f32.mrf.mxu0 }
 0x109   : > { %2261 = vmatprep.subr.mxu1 %v2260_v58 }
 0x10a   : > { %v439_v59 = vpop.f32.mrf.mxu0  ;;  %2262 = vmatpush3.msra.mxu1 %v2260_v58 }
 0x10b   : > { %2263 = vmatprep.subr.mxu1 %v439_v59 }
 0x10c   : > { %2264 = vmatpush3.msra.mxu1 %v439_v59 }
 0x10d   : > { %2265 = vmatprep.subr.mxu1 %v2257_v56 }
 0x10e   : > { %2266 = vmatpush3.msra.mxu1 %v2257_v56 }
 0x10f   : > { %2267 = vmatprep.subr.mxu1 %v429_v57 }
 0x110   : > { %2268 = vmatpush3.msra.mxu1 %v429_v57 }
 0x111   : > { %2269 = vmatprep.subr.mxu1 %v2254_v54 }
 0x112   : > { %2270 = vmatpush3.msra.mxu1 %v2254_v54 }
 0x113   : > { %2271 = vmatprep.subr.mxu1 %v419_v55 }
 0x114   : > { %2272 = vmatpush3.msra.mxu1 %v419_v55 }
 0x115   : > { %2273 = vmatprep.subr.mxu1 %v2251_v52 }
 0x116   : > { %2274 = vmatpush3.msra.mxu1 %v2251_v52 }
 0x117   : > { %2275 = vmatprep.subr.mxu1 %v409_v53 }
 0x118   : > { %2276 = vmatpush3.msra.mxu1 %v409_v53 }
 0x119   : > { %2277 = vmatprep.subr.mxu1 %v2248_v50 }
 0x11a   : > { %2278 = vmatpush3.msra.mxu1 %v2248_v50 }
 0x11b   : > { %2279 = vmatprep.subr.mxu1 %v399_v51 }
 0x11c   : > { %2280 = vmatpush3.msra.mxu1 %v399_v51 }
 0x11d   : > { %2281 = vmatprep.subr.mxu1 %v2245_v48 }
 0x11e   : > { %2282 = vmatpush3.msra.mxu1 %v2245_v48 }
 0x11f   : > { %2283 = vmatprep.subr.mxu1 %v389_v49 }
 0x120   : > { %2284 = vmatpush3.msra.mxu1 %v389_v49 }
 0x121   : > { %2285 = vmatprep.subr.mxu1 %v2242_v46 }
 0x122   : > { %2286 = vmatpush3.msra.mxu1 %v2242_v46 }
 0x123   : > { %2287 = vmatprep.subr.mxu1 %v379_v47 }
 0x124   : > { %2288 = vmatpush3.msra.mxu1 %v379_v47 }
 0x125   : > { %2289 = vmatprep.subr.mxu1 %v2239_v44 }
 0x126   : > { %2290 = vmatpush3.msra.mxu1 %v2239_v44 }
 0x127   : > { %2291 = vmatprep.subr.mxu1 %v369_v45 }
 0x128   : > { %2292 = vmatpush3.msra.mxu1 %v369_v45 }
 0x129   : > { %2294 = vmatmul.mubr.f32.vlgmr.msra.gmra.mxu1 %v2893_v60 }
 0x12a   : > { %2296 = vmatprep.mubr.f32.mxu1 %v2896_v61 }
 0x12d   : > { %2297 = vmatmul.mubr.f32.gmra.mxu1 %v2901_v62 }
 0x12e   : > { %2299 = vmatprep.mubr.f32.mxu1 %v2904_v63 }
 0x131   : > { %2300 = vmatmul.mubr.f32.gmra.mxu1 %v2909_v0 }
 0x132   : > { %2302 = vmatprep.mubr.f32.mxu1 %v2912_v1 }
 0x135   : > { %2303 = vmatmul.mubr.f32.gmra.mxu1 %v2917_v2 }
 0x136   : > { %2305 = vmatprep.mubr.f32.mxu1 %v2920_v3 }
 0x139   : > { %2306 = vmatmul.mubr.f32.gmra.mxu1 %v2925_v4 }
 0x13a   : > { %2308 = vmatprep.mubr.f32.mxu1 %v2928_v5 }
 0x13d   : > { %2309 = vmatmul.mubr.f32.gmra.mxu1 %v2933_v6 }
 0x13e   : > { %2311 = vmatprep.mubr.f32.mxu1 %v2936_v7 }
 0x141   : > { %2312 = vmatmul.mubr.f32.gmra.mxu1 %v2941_v8 }
 0x142   : > { %2314 = vmatprep.mubr.f32.mxu1 %v2944_v9 }
 0x145   : > { %2315 = vmatmul.mubr.f32.gmra.mxu1 %v2949_v10 }
 0x146   : > { %2405 = vmatprep.mubr.f32.mxu1 %v2856_v32 }
 0x1e9   : > { %v2295_v17 = vpop.f32.mrf.mxu1 }
 0x1ea   : > { %v525_v18 = vadd.f32 %v2295_v17, %v2971_v16 }
 0x1eb   : > { %v519_v19 = vpop.f32.mrf.mxu1 }
 0x1ec   : > { %v520_v20 = vadd.f32 %v2971_v16, %v519_v19  ;;  %v599_v21 = vmul.f32 0.01, %v525_v18 }
 0x1ed   : > { %v2298_v22 = vpop.f32.mrf.mxu1 }
 0x1ee   : > { %v598_v23 = vmul.f32 0.01, %v520_v20  ;;  %v535_v24 = vadd.f32 %v2298_v22, %v2971_v16  ;;  %v615_v28 = vmax.f32 %v525_v18, %v599_v21 }
 0x1ef   : > { %v529_v25 = vpop.f32.mrf.mxu1 }
 0x1f0   : > { %v614_v26 = vmax.f32 %v520_v20, %v598_v23  ;;  %v530_v27 = vadd.f32 %v2971_v16, %v529_v25  ;;  %v601_v29 = vmul.f32 0.01, %v535_v24 }
 0x1f1   : > { %v2301_v30 = vpop.f32.mrf.mxu1 }
 0x1f2   : > { %v600_v31 = vmul.f32 0.01, %v530_v27  ;;  %v545_v33 = vadd.f32 %v2301_v30, %v2971_v16  ;;  %2349 = vmatprep.mubr.f32.mxu0 %v614_v26  ;;  %v617_v37 = vmax.f32 %v535_v24, %v601_v29 }
 0x1f3   : > { %v539_v34 = vpop.f32.mrf.mxu1  ;;  %2350 = vmatmul.mubr.f32.vlgmr.msra.gmra.mxu0 %v615_v28 }
 0x1f4   : > { %v616_v35 = vmax.f32 %v530_v27, %v600_v31  ;;  %v540_v36 = vadd.f32 %v2971_v16, %v539_v34  ;;  %v603_v38 = vmul.f32 0.01, %v545_v33 }
 0x1f5   : > { %v2304_v39 = vpop.f32.mrf.mxu1 }
 0x1f6   : > { %v602_v40 = vmul.f32 0.01, %v540_v36  ;;  %v555_v41 = vadd.f32 %v2304_v39, %v2971_v16  ;;  %2352 = vmatprep.mubr.f32.mxu0 %v616_v35  ;;  %v619_v45 = vmax.f32 %v545_v33, %v603_v38  ;;  %v1858_v35 = vld [vmem:[%s3409_s3 + $0x178] sm:$0xff]  ;;  %v1853_v39 = vld [vmem:[%s3409_s3 + $0x150] sm:$0xff] }
 0x1f7   : > { %v549_v42 = vpop.f32.mrf.mxu1  ;;  %2353 = vmatmul.mubr.f32.gmra.mxu0 %v617_v37  ;;  %2429 = vmatprep.subr.mxu0 %v1858_v35  ;;  %v1855_v37 = vld [vmem:[%s3409_s3 + $0x160] sm:$0xff]  ;;  %v1854_v38 = vld [vmem:[%s3409_s3 + $0x158] sm:$0xff] }
 0x1f8   : > { %v618_v43 = vmax.f32 %v540_v36, %v602_v40  ;;  %v550_v44 = vadd.f32 %v2971_v16, %v549_v42  ;;  %v605_v46 = vmul.f32 0.01, %v555_v41  ;;  %v1857_v36 = vld [vmem:[%s3409_s3 + $0x170] sm:$0xff]  ;;  %2430 = vmatpush3.msra.mxu0 %v1858_v35  ;;  %v1852_v40 = vld [vmem:[%s3409_s3 + $0x148] sm:$0xff]  ;;  %v1850_v42 = vld [vmem:[%s3409_s3 + $0x138] sm:$0xff] }
 0x1f9   : > { %v2307_v47 = vpop.f32.mrf.mxu1  ;;  %2431 = vmatprep.subr.mxu0 %v1857_v36 }
 0x1fa   : > { %v604_v48 = vmul.f32 0.01, %v550_v44  ;;  %v565_v49 = vadd.f32 %v2307_v47, %v2971_v16  ;;  %2355 = vmatprep.mubr.f32.mxu0 %v618_v43  ;;  %v621_v53 = vmax.f32 %v555_v41, %v605_v46  ;;  %2432 = vmatpush3.msra.mxu0 %v1857_v36  ;;  %v1851_v41 = vld [vmem:[%s3409_s3 + $0x140] sm:$0xff]  ;;  %v1849_v43 = vld [vmem:[%s3409_s3 + $0x130] sm:$0xff] }
 0x1fb   : > { %v559_v50 = vpop.f32.mrf.mxu1  ;;  %2356 = vmatmul.mubr.f32.gmra.mxu0 %v619_v45 }
 0x1fc   : > { %v620_v51 = vmax.f32 %v550_v44, %v604_v48  ;;  %v560_v52 = vadd.f32 %v2971_v16, %v559_v50  ;;  %v607_v54 = vmul.f32 0.01, %v565_v49  ;;  %v1848_v44 = vld [vmem:[%s3409_s3 + $0x128] sm:$0xff] }
 0x1fd   : > { %v2310_v55 = vpop.f32.mrf.mxu1 }
 0x1fe   : > { %v606_v56 = vmul.f32 0.01, %v560_v52  ;;  %v575_v57 = vadd.f32 %v2310_v55, %v2971_v16  ;;  %2358 = vmatprep.mubr.f32.mxu0 %v620_v51  ;;  %v623_v12 = vmax.f32 %v565_v49, %v607_v54 }
 0x1ff   : > { %v569_v58 = vpop.f32.mrf.mxu1  ;;  %2359 = vmatmul.mubr.f32.gmra.mxu0 %v621_v53 }
 0x200   : > { %v622_v59 = vmax.f32 %v560_v52, %v606_v56  ;;  %v570_v11 = vadd.f32 %v2971_v16, %v569_v58  ;;  %v609_v13 = vmul.f32 0.01, %v575_v57 }
 0x201   : > { %v2313_v14 = vpop.f32.mrf.mxu1 }
 0x202   : > { %v608_v15 = vmul.f32 0.01, %v570_v11  ;;  %v585_v17 = vadd.f32 %v2313_v14, %v2971_v16  ;;  %2361 = vmatprep.mubr.f32.mxu0 %v622_v59  ;;  %v625_v21 = vmax.f32 %v575_v57, %v609_v13  ;;  %v1846_v13 = vld [vmem:[%s3409_s3 + $0x118] sm:$0xff]  ;;  %v1845_v14 = vld [vmem:[%s3409_s3 + $0x110] sm:$0xff] }
 0x203   : > { %v579_v18 = vpop.f32.mrf.mxu1  ;;  %2362 = vmatmul.mubr.f32.gmra.mxu0 %v623_v12  ;;  %v1847_v12 = vld [vmem:[%s3409_s3 + $0x120] sm:$0xff] }
 0x204   : > { %v624_v19 = vmax.f32 %v570_v11, %v608_v15  ;;  %v580_v20 = vadd.f32 %v2971_v16, %v579_v18  ;;  %v611_v22 = vmul.f32 0.01, %v585_v17  ;;  %v1843_v15 = vld [vmem:[%s3409_s3 + $0x100] sm:$0xff] }
 0x205   : > { %v2316_v23 = vpop.f32.mrf.mxu1 }
 0x206   : > { %v610_v24 = vmul.f32 0.01, %v580_v20  ;;  %v595_v25 = vadd.f32 %v2316_v23, %v2971_v16  ;;  %2364 = vmatprep.mubr.f32.mxu0 %v624_v19  ;;  %v627_v29 = vmax.f32 %v585_v17, %v611_v22  ;;  %v3056_v17 = vld [vmem:[%s3410_s4 + $0x1] ss:$0 sm:$0xff] }
 0x207   : > { %v589_v26 = vpop.f32.mrf.mxu1  ;;  %2365 = vmatmul.mubr.f32.gmra.mxu0 %v625_v21 }
 0x208   : > { %v626_v27 = vmax.f32 %v580_v20, %v610_v24  ;;  %v590_v28 = vadd.f32 %v2971_v16, %v589_v26  ;;  %v613_v30 = vmul.f32 0.01, %v595_v25  ;;  %v1856_v16 = vld [vmem:[%s3409_s3 + $0x168] sm:$0xff] }
 0x209   : > { %2433 = vmatprep.subr.mxu0 %v1856_v16 }
 0x20a   : > { %v612_v31 = vmul.f32 0.01, %v590_v28  ;;  %2367 = vmatprep.mubr.f32.mxu0 %v626_v27  ;;  %v629_v34 = vmax.f32 %v595_v25, %v613_v30  ;;  %2434 = vmatpush3.msra.mxu0 %v1856_v16 }
 0x20b   : > { %2368 = vmatmul.mubr.f32.gmra.mxu0 %v627_v29  ;;  %2435 = vmatprep.subr.mxu0 %v1855_v37 }
 0x20c   : > { %v628_v33 = vmax.f32 %v590_v28, %v612_v31  ;;  %2436 = vmatpush3.msra.mxu0 %v1855_v37 }
 0x20d   : > { %2437 = vmatprep.subr.mxu0 %v1854_v38 }
 0x20e   : > { %2370 = vmatprep.mubr.f32.mxu0 %v628_v33  ;;  %2438 = vmatpush3.msra.mxu0 %v1854_v38 }
 0x20f   : > { %2371 = vmatmul.mubr.f32.gmra.mxu0 %v629_v34  ;;  %2439 = vmatprep.subr.mxu0 %v1853_v39 }
 0x210   : > { %2440 = vmatpush3.msra.mxu0 %v1853_v39 }
 0x211   : > { %2441 = vmatprep.subr.mxu0 %v1852_v40 }
 0x212   : > { %2442 = vmatpush3.msra.mxu0 %v1852_v40 }
 0x213   : > { %2443 = vmatprep.subr.mxu0 %v1851_v41 }
 0x214   : > { %2444 = vmatpush3.msra.mxu0 %v1851_v41 }
 0x215   : > { %2445 = vmatprep.subr.mxu0 %v1850_v42 }
 0x216   : > { %2446 = vmatpush3.msra.mxu0 %v1850_v42 }
 0x217   : > { %2447 = vmatprep.subr.mxu0 %v1849_v43 }
 0x218   : > { %2448 = vmatpush3.msra.mxu0 %v1849_v43 }
 0x219   : > { %2449 = vmatprep.subr.mxu0 %v1848_v44 }
 0x21a   : > { %2450 = vmatpush3.msra.mxu0 %v1848_v44 }
 0x21b   : > { %2451 = vmatprep.subr.mxu0 %v1847_v12 }
 0x21c   : > { %2452 = vmatpush3.msra.mxu0 %v1847_v12 }
 0x21d   : > { %2453 = vmatprep.subr.mxu0 %v1846_v13 }
 0x21e   : > { %2454 = vmatpush3.msra.mxu0 %v1846_v13 }
 0x21f   : > { %2455 = vmatprep.subr.mxu0 %v1845_v14 }
 0x220   : > { %2456 = vmatpush3.msra.mxu0 %v1845_v14 }
 0x2b3   : > { %v2351_v45 = vpop.f32.mrf.mxu0 }
 0x2b5   : > { %v713_v46 = vpop.f32.mrf.mxu0 }
 0x2b7   : > { %v2354_v47 = vpop.f32.mrf.mxu0 }
 0x2b9   : > { %v723_v48 = vpop.f32.mrf.mxu0 }
 0x2bb   : > { %v2357_v49 = vpop.f32.mrf.mxu0 }
 0x2bd   : > { %v733_v50 = vpop.f32.mrf.mxu0 }
 0x2bf   : > { %v2360_v51 = vpop.f32.mrf.mxu0 }
 0x2c1   : > { %v743_v52 = vpop.f32.mrf.mxu0 }
 0x2c3   : > { %v2363_v53 = vpop.f32.mrf.mxu0 }
 0x2c5   : > { %v753_v54 = vpop.f32.mrf.mxu0 }
 0x2c7   : > { %v2366_v55 = vpop.f32.mrf.mxu0 }
 0x2c9   : > { %v763_v56 = vpop.f32.mrf.mxu0 }
 0x2cb   : > { %v2369_v57 = vpop.f32.mrf.mxu0 }
 0x2cd   : > { %v773_v58 = vpop.f32.mrf.mxu0 }
 0x2cf   : > { %v2372_v59 = vpop.f32.mrf.mxu0 }
 0x2d0   : > { %2373 = vmatprep.subr.mxu1 %v2372_v59 }
 0x2d1   : > { %v783_v11 = vpop.f32.mrf.mxu0  ;;  %2374 = vmatpush3.msra.mxu1 %v2372_v59 }
 0x2d2   : > { %2375 = vmatprep.subr.mxu1 %v783_v11 }
 0x2d3   : > { %2376 = vmatpush3.msra.mxu1 %v783_v11 }
 0x2d4   : > { %2377 = vmatprep.subr.mxu1 %v2369_v57 }
 0x2d5   : > { %2378 = vmatpush3.msra.mxu1 %v2369_v57 }
 0x2d6   : > { %2379 = vmatprep.subr.mxu1 %v773_v58 }
 0x2d7   : > { %2380 = vmatpush3.msra.mxu1 %v773_v58 }
 0x2d8   : > { %2381 = vmatprep.subr.mxu1 %v2366_v55 }
 0x2d9   : > { %2382 = vmatpush3.msra.mxu1 %v2366_v55 }
 0x2da   : > { %2383 = vmatprep.subr.mxu1 %v763_v56 }
 0x2db   : > { %2384 = vmatpush3.msra.mxu1 %v763_v56 }
 0x2dc   : > { %2385 = vmatprep.subr.mxu1 %v2363_v53 }
 0x2dd   : > { %2386 = vmatpush3.msra.mxu1 %v2363_v53 }
 0x2de   : > { %2387 = vmatprep.subr.mxu1 %v753_v54 }
 0x2df   : > { %2388 = vmatpush3.msra.mxu1 %v753_v54 }
 0x2e0   : > { %2389 = vmatprep.subr.mxu1 %v2360_v51 }
 0x2e1   : > { %2390 = vmatpush3.msra.mxu1 %v2360_v51 }
 0x2e2   : > { %2391 = vmatprep.subr.mxu1 %v743_v52 }
 0x2e3   : > { %2392 = vmatpush3.msra.mxu1 %v743_v52 }
 0x2e4   : > { %2393 = vmatprep.subr.mxu1 %v2357_v49 }
 0x2e5   : > { %2394 = vmatpush3.msra.mxu1 %v2357_v49 }
 0x2e6   : > { %2395 = vmatprep.subr.mxu1 %v733_v50 }
 0x2e7   : > { %2396 = vmatpush3.msra.mxu1 %v733_v50 }
 0x2e8   : > { %2397 = vmatprep.subr.mxu1 %v2354_v47 }
 0x2e9   : > { %2398 = vmatpush3.msra.mxu1 %v2354_v47 }
 0x2ea   : > { %2399 = vmatprep.subr.mxu1 %v723_v48 }
 0x2eb   : > { %2400 = vmatpush3.msra.mxu1 %v723_v48 }
 0x2ec   : > { %2401 = vmatprep.subr.mxu1 %v2351_v45 }
 0x2ed   : > { %2402 = vmatpush3.msra.mxu1 %v2351_v45 }
 0x2ee   : > { %2403 = vmatprep.subr.mxu1 %v713_v46 }
 0x2ef   : > { %2404 = vmatpush3.msra.mxu1 %v713_v46 }
 0x2f0   : > { %2406 = vmatmul.mubr.f32.vlgmr.msra.gmra.mxu1 %v2893_v60 }
 0x2f1   : > { %2408 = vmatprep.mubr.f32.mxu1 %v2896_v61 }
 0x2f4   : > { %2409 = vmatmul.mubr.f32.gmra.mxu1 %v2901_v62 }
 0x2f5   : > { %2411 = vmatprep.mubr.f32.mxu1 %v2904_v63 }
 0x2f8   : > { %2412 = vmatmul.mubr.f32.gmra.mxu1 %v2909_v0 }
 0x2f9   : > { %2414 = vmatprep.mubr.f32.mxu1 %v2912_v1 }
 0x2fc   : > { %2415 = vmatmul.mubr.f32.gmra.mxu1 %v2917_v2 }
 0x2fd   : > { %2417 = vmatprep.mubr.f32.mxu1 %v2920_v3 }
 0x300   : > { %2418 = vmatmul.mubr.f32.gmra.mxu1 %v2925_v4 }
 0x301   : > { %2420 = vmatprep.mubr.f32.mxu1 %v2928_v5 }
 0x304   : > { %2421 = vmatmul.mubr.f32.gmra.mxu1 %v2933_v6 }
 0x305   : > { %2423 = vmatprep.mubr.f32.mxu1 %v2936_v7 }
 0x308   : > { %2424 = vmatmul.mubr.f32.gmra.mxu1 %v2941_v8 }
 0x309   : > { %2426 = vmatprep.mubr.f32.mxu1 %v2944_v9 }
 0x30c   : > { %2427 = vmatmul.mubr.f32.gmra.mxu1 %v2949_v10 }
 0x30d   : > { %2517 = vmatprep.mubr.f32.mxu1 %v2856_v32  ;;  %v1844_v32 = vld [vmem:[%s3409_s3 + $0x108] sm:$0xff] }
 0x30e   : > { %2457 = vmatprep.subr.mxu0 %v1844_v32 }
 0x30f   : > { %2458 = vmatpush3.msra.mxu0 %v1844_v32 }
 0x310   : > { %2459 = vmatprep.subr.mxu0 %v1843_v15 }
 0x311   : > { %2460 = vmatpush3.msra.mxu0 %v1843_v15 }
 0x3b0   : > { %v2407_v18 = vpop.f32.mrf.mxu1 }
 0x3b1   : > { %v869_v19 = vadd.f32 %v2407_v18, %v3056_v17 }
 0x3b2   : > { %v863_v20 = vpop.f32.mrf.mxu1 }
 0x3b3   : > { %v864_v21 = vadd.f32 %v3056_v17, %v863_v20  ;;  %v943_v22 = vmul.f32 0.01, %v869_v19 }
 0x3b4   : > { %v2410_v23 = vpop.f32.mrf.mxu1 }
 0x3b5   : > { %v942_v24 = vmul.f32 0.01, %v864_v21  ;;  %v879_v25 = vadd.f32 %v2410_v23, %v3056_v17  ;;  %v959_v29 = vmax.f32 %v869_v19, %v943_v22 }
 0x3b6   : > { %v873_v26 = vpop.f32.mrf.mxu1 }
 0x3b7   : > { %v958_v27 = vmax.f32 %v864_v21, %v942_v24  ;;  %v874_v28 = vadd.f32 %v3056_v17, %v873_v26  ;;  %v945_v30 = vmul.f32 0.01, %v879_v25 }
 0x3b8   : > { %v2413_v31 = vpop.f32.mrf.mxu1 }
 0x3b9   : > { %v944_v33 = vmul.f32 0.01, %v874_v28  ;;  %v889_v34 = vadd.f32 %v2413_v31, %v3056_v17  ;;  %2461 = vmatprep.mubr.f32.mxu0 %v958_v27  ;;  %v961_v37 = vmax.f32 %v879_v25, %v945_v30 }
 0x3ba   : > { %v883_v35 = vpop.f32.mrf.mxu1  ;;  %2462 = vmatmul.mubr.f32.vlgmr.msra.gmra.mxu0 %v959_v29 }
 0x3bb   : > { %v960_v36 = vmax.f32 %v874_v28, %v944_v33  ;;  %v884_v16 = vadd.f32 %v3056_v17, %v883_v35  ;;  %v947_v38 = vmul.f32 0.01, %v889_v34 }
 0x3bc   : > { %v2416_v39 = vpop.f32.mrf.mxu1 }
 0x3bd   : > { %v946_v40 = vmul.f32 0.01, %v884_v16  ;;  %v899_v41 = vadd.f32 %v2416_v39, %v3056_v17  ;;  %2464 = vmatprep.mubr.f32.mxu0 %v960_v36  ;;  %v963_v45 = vmax.f32 %v889_v34, %v947_v38 }
 0x3be   : > { %v893_v42 = vpop.f32.mrf.mxu1  ;;  %2465 = vmatmul.mubr.f32.gmra.mxu0 %v961_v37 }
 0x3bf   : > { %v962_v43 = vmax.f32 %v884_v16, %v946_v40  ;;  %v894_v44 = vadd.f32 %v3056_v17, %v893_v42  ;;  %v949_v46 = vmul.f32 0.01, %v899_v41 }
 0x3c0   : > { %v2419_v47 = vpop.f32.mrf.mxu1 }
 0x3c1   : > { %v948_v48 = vmul.f32 0.01, %v894_v44  ;;  %v909_v49 = vadd.f32 %v2419_v47, %v3056_v17  ;;  %2467 = vmatprep.mubr.f32.mxu0 %v962_v43  ;;  %v965_v53 = vmax.f32 %v899_v41, %v949_v46 }
 0x3c2   : > { %v903_v50 = vpop.f32.mrf.mxu1  ;;  %2468 = vmatmul.mubr.f32.gmra.mxu0 %v963_v45 }
 0x3c3   : > { %v964_v51 = vmax.f32 %v894_v44, %v948_v48  ;;  %v904_v52 = vadd.f32 %v3056_v17, %v903_v50  ;;  %v951_v54 = vmul.f32 0.01, %v909_v49 }
 0x3c4   : > { %v2422_v55 = vpop.f32.mrf.mxu1 }
 0x3c5   : > { %v950_v56 = vmul.f32 0.01, %v904_v52  ;;  %v919_v57 = vadd.f32 %v2422_v55, %v3056_v17  ;;  %2470 = vmatprep.mubr.f32.mxu0 %v964_v51  ;;  %v967_v12 = vmax.f32 %v909_v49, %v951_v54  ;;  %v1861_v49 = vld [vmem:[%s3409_s3 + $0x188] sm:$0xff] }
 0x3c6   : > { %v913_v58 = vpop.f32.mrf.mxu1  ;;  %2471 = vmatmul.mubr.f32.gmra.mxu0 %v965_v53 }
 0x3c7   : > { %v966_v59 = vmax.f32 %v904_v52, %v950_v56  ;;  %v914_v11 = vadd.f32 %v3056_v17, %v913_v58  ;;  %v953_v13 = vmul.f32 0.01, %v919_v57 }
 0x3c8   : > { %v2425_v14 = vpop.f32.mrf.mxu1 }
 0x3c9   : > { %v952_v32 = vmul.f32 0.01, %v914_v11  ;;  %v929_v15 = vadd.f32 %v2425_v14, %v3056_v17  ;;  %2473 = vmatprep.mubr.f32.mxu0 %v966_v59  ;;  %v969_v21 = vmax.f32 %v919_v57, %v953_v13 }
 0x3ca   : > { %v923_v18 = vpop.f32.mrf.mxu1  ;;  %2474 = vmatmul.mubr.f32.gmra.mxu0 %v967_v12 }
 0x3cb   : > { %v968_v19 = vmax.f32 %v914_v11, %v952_v32  ;;  %v924_v20 = vadd.f32 %v3056_v17, %v923_v18  ;;  %v955_v22 = vmul.f32 0.01, %v929_v15  ;;  %v1859_v32 = vld [vmem:[%s3410_s4 + $0x2] ss:$0 sm:$0xff] }
 0x3cc   : > { %v2428_v23 = vpop.f32.mrf.mxu1 }
 0x3cd   : > { %v954_v24 = vmul.f32 0.01, %v924_v20  ;;  %v939_v25 = vadd.f32 %v2428_v23, %v3056_v17  ;;  %2476 = vmatprep.mubr.f32.mxu0 %v968_v19  ;;  %v971_v29 = vmax.f32 %v929_v15, %v955_v22 }
 0x3ce   : > { %v933_v26 = vpop.f32.mrf.mxu1  ;;  %2477 = vmatmul.mubr.f32.gmra.mxu0 %v969_v21 }
 0x3cf   : > { %v970_v27 = vmax.f32 %v924_v20, %v954_v24  ;;  %v934_v28 = vadd.f32 %v3056_v17, %v933_v26  ;;  %v957_v30 = vmul.f32 0.01, %v939_v25 }
 0x3d1   : > { %v956_v31 = vmul.f32 0.01, %v934_v28  ;;  %2479 = vmatprep.mubr.f32.mxu0 %v970_v27  ;;  %v973_v34 = vmax.f32 %v939_v25, %v957_v30 }
 0x3d2   : > { %2480 = vmatmul.mubr.f32.gmra.mxu0 %v971_v29 }
 0x3d3   : > { %v972_v33 = vmax.f32 %v934_v28, %v956_v31 }
 0x3d5   : > { %2482 = vmatprep.mubr.f32.mxu0 %v972_v33 }
 0x3d6   : > { %2483 = vmatmul.mubr.f32.gmra.mxu0 %v973_v34 }
 0x47a   : > { %v2463_v35 = vpop.f32.mrf.mxu0 }
 0x47c   : > { %v1057_v36 = vpop.f32.mrf.mxu0 }
 0x47e   : > { %v2466_v16 = vpop.f32.mrf.mxu0 }
 0x480   : > { %v1067_v37 = vpop.f32.mrf.mxu0 }
 0x482   : > { %v2469_v38 = vpop.f32.mrf.mxu0 }
 0x484   : > { %v1077_v39 = vpop.f32.mrf.mxu0 }
 0x486   : > { %v2472_v40 = vpop.f32.mrf.mxu0 }
 0x488   : > { %v1087_v41 = vpop.f32.mrf.mxu0 }
 0x48a   : > { %v2475_v42 = vpop.f32.mrf.mxu0 }
 0x48c   : > { %v1097_v43 = vpop.f32.mrf.mxu0 }
 0x48e   : > { %v2478_v17 = vpop.f32.mrf.mxu0 }
 0x490   : > { %v1107_v44 = vpop.f32.mrf.mxu0 }
 0x492   : > { %v2481_v45 = vpop.f32.mrf.mxu0 }
 0x494   : > { %v1117_v46 = vpop.f32.mrf.mxu0 }
 0x496   : > { %v2484_v47 = vpop.f32.mrf.mxu0 }
 0x497   : > { %2485 = vmatprep.subr.mxu1 %v2484_v47 }
 0x498   : > { %v1127_v48 = vpop.f32.mrf.mxu0  ;;  %2486 = vmatpush3.msra.mxu1 %v2484_v47 }
 0x499   : > { %2487 = vmatprep.subr.mxu1 %v1127_v48 }
 0x49a   : > { %2488 = vmatpush3.msra.mxu1 %v1127_v48 }
 0x49b   : > { %2489 = vmatprep.subr.mxu1 %v2481_v45 }
 0x49c   : > { %2490 = vmatpush3.msra.mxu1 %v2481_v45 }
 0x49d   : > { %2491 = vmatprep.subr.mxu1 %v1117_v46 }
 0x49e   : > { %2492 = vmatpush3.msra.mxu1 %v1117_v46 }
 0x49f   : > { %2493 = vmatprep.subr.mxu1 %v2478_v17 }
 0x4a0   : > { %2494 = vmatpush3.msra.mxu1 %v2478_v17 }
 0x4a1   : > { %2495 = vmatprep.subr.mxu1 %v1107_v44 }
 0x4a2   : > { %2496 = vmatpush3.msra.mxu1 %v1107_v44 }
 0x4a3   : > { %2497 = vmatprep.subr.mxu1 %v2475_v42 }
 0x4a4   : > { %2498 = vmatpush3.msra.mxu1 %v2475_v42 }
 0x4a5   : > { %2499 = vmatprep.subr.mxu1 %v1097_v43 }
 0x4a6   : > { %2500 = vmatpush3.msra.mxu1 %v1097_v43 }
 0x4a7   : > { %2501 = vmatprep.subr.mxu1 %v2472_v40 }
 0x4a8   : > { %2502 = vmatpush3.msra.mxu1 %v2472_v40 }
 0x4a9   : > { %2503 = vmatprep.subr.mxu1 %v1087_v41 }
 0x4aa   : > { %2504 = vmatpush3.msra.mxu1 %v1087_v41 }
 0x4ab   : > { %2505 = vmatprep.subr.mxu1 %v2469_v38 }
 0x4ac   : > { %2506 = vmatpush3.msra.mxu1 %v2469_v38 }
 0x4ad   : > { %2507 = vmatprep.subr.mxu1 %v1077_v39 }
 0x4ae   : > { %2508 = vmatpush3.msra.mxu1 %v1077_v39 }
 0x4af   : > { %2509 = vmatprep.subr.mxu1 %v2466_v16 }
 0x4b0   : > { %2510 = vmatpush3.msra.mxu1 %v2466_v16 }
 0x4b1   : > { %2511 = vmatprep.subr.mxu1 %v1067_v37 }
 0x4b2   : > { %2512 = vmatpush3.msra.mxu1 %v1067_v37 }
 0x4b3   : > { %2513 = vmatprep.subr.mxu1 %v2463_v35 }
 0x4b4   : > { %2514 = vmatpush3.msra.mxu1 %v2463_v35 }
 0x4b5   : > { %2515 = vmatprep.subr.mxu1 %v1057_v36 }
 0x4b6   : > { %2516 = vmatpush3.msra.mxu1 %v1057_v36 }
 0x4b7   : > { %2518 = vmatmul.mubr.f32.vlgmr.msra.gmra.mxu1 %v2893_v60  ;;  %v2734_v60 = vmov 0.0  }
 0x4b8   : > { %2520 = vmatprep.mubr.f32.mxu1 %v2896_v61  ;;  %2541 = vmatprep.subr.mxu0 %v2734_v60  ;;  %v1875_v61 = vld [vmem:[%s3409_s3 + $0x1f8] sm:$0xff] }
 0x4b9   : > { %2576 = vmatprep.subr.mxu1 %v2734_v60  ;;  %2573 = vmatprep.mubr.msk.f32.mxu0 %vm2735_vm0, %v2734_v60 }
 0x4ba   : > { %2577 = vmatpush3.msra.mxu1 %v1875_v61 }
 0x4bb   : > { %2521 = vmatmul.mubr.f32.gmra.mxu1 %v2901_v62  ;;  %v1874_v62 = vld [vmem:[%s3409_s3 + $0x1f0] sm:$0xff]  ;;  %2578 = vmatprep.subr.mxu1 %v2734_v60 }
 0x4bc   : > { %2523 = vmatprep.mubr.f32.mxu1 %v2904_v63  ;;  %v1873_v63 = vld [vmem:[%s3409_s3 + $0x1e8] sm:$0xff]  ;;  %2579 = vmatpush3.msra.mxu1 %v1874_v62 }
 0x4bd   : > { %2580 = vmatprep.subr.mxu1 %v2734_v60 }
 0x4be   : > { %2581 = vmatpush3.msra.mxu1 %v1873_v63 }
 0x4bf   : > { %2524 = vmatmul.mubr.f32.gmra.mxu1 %v2909_v0  ;;  %v1872_v0 = vld [vmem:[%s3409_s3 + $0x1e0] sm:$0xff]  ;;  %2582 = vmatprep.subr.mxu1 %v2734_v60 }
 0x4c0   : > { %2526 = vmatprep.mubr.f32.mxu1 %v2912_v1  ;;  %v1871_v1 = vld [vmem:[%s3409_s3 + $0x1d8] sm:$0xff]  ;;  %2583 = vmatpush3.msra.mxu1 %v1872_v0 }
 0x4c1   : > { %2584 = vmatprep.subr.mxu1 %v2734_v60 }
 0x4c2   : > { %2585 = vmatpush3.msra.mxu1 %v1871_v1 }
 0x4c3   : > { %2527 = vmatmul.mubr.f32.gmra.mxu1 %v2917_v2  ;;  %v1870_v2 = vld [vmem:[%s3409_s3 + $0x1d0] sm:$0xff]  ;;  %2586 = vmatprep.subr.mxu1 %v2734_v60 }
 0x4c4   : > { %2529 = vmatprep.mubr.f32.mxu1 %v2920_v3  ;;  %v1869_v3 = vld [vmem:[%s3409_s3 + $0x1c8] sm:$0xff]  ;;  %2587 = vmatpush3.msra.mxu1 %v1870_v2 }
 0x4c5   : > { %2588 = vmatprep.subr.mxu1 %v2734_v60 }
 0x4c6   : > { %2589 = vmatpush3.msra.mxu1 %v1869_v3 }
 0x4c7   : > { %2530 = vmatmul.mubr.f32.gmra.mxu1 %v2925_v4  ;;  %v1868_v4 = vld [vmem:[%s3409_s3 + $0x1c0] sm:$0xff]  ;;  %2590 = vmatprep.subr.mxu1 %v2734_v60 }
 0x4c8   : > { %2532 = vmatprep.mubr.f32.mxu1 %v2928_v5  ;;  %v1867_v5 = vld [vmem:[%s3409_s3 + $0x1b8] sm:$0xff]  ;;  %2591 = vmatpush3.msra.mxu1 %v1868_v4 }
 0x4c9   : > { %2592 = vmatprep.subr.mxu1 %v2734_v60 }
 0x4ca   : > { %2593 = vmatpush3.msra.mxu1 %v1867_v5 }
 0x4cb   : > { %2533 = vmatmul.mubr.f32.gmra.mxu1 %v2933_v6  ;;  %v1866_v6 = vld [vmem:[%s3409_s3 + $0x1b0] sm:$0xff]  ;;  %2594 = vmatprep.subr.mxu1 %v2734_v60 }
 0x4cc   : > { %2535 = vmatprep.mubr.f32.mxu1 %v2936_v7  ;;  %v1865_v7 = vld [vmem:[%s3409_s3 + $0x1a8] sm:$0xff]  ;;  %2595 = vmatpush3.msra.mxu1 %v1866_v6 }
 0x4cd   : > { %2596 = vmatprep.subr.mxu1 %v2734_v60 }
 0x4ce   : > { %2597 = vmatpush3.msra.mxu1 %v1865_v7 }
 0x4cf   : > { %2536 = vmatmul.mubr.f32.gmra.mxu1 %v2941_v8  ;;  %v1864_v8 = vld [vmem:[%s3409_s3 + $0x1a0] sm:$0xff]  ;;  %2598 = vmatprep.subr.mxu1 %v2734_v60 }
 0x4d0   : > { %2538 = vmatprep.mubr.f32.mxu1 %v2944_v9  ;;  %v1863_v9 = vld [vmem:[%s3409_s3 + $0x198] sm:$0xff]  ;;  %2599 = vmatpush3.msra.mxu1 %v1864_v8 }
 0x4d1   : > { %2600 = vmatprep.subr.mxu1 %v2734_v60 }
 0x4d2   : > { %2601 = vmatpush3.msra.mxu1 %v1863_v9 }
 0x4d3   : > { %2539 = vmatmul.mubr.f32.gmra.mxu1 %v2949_v10  ;;  %v1862_v10 = vld [vmem:[%s3409_s3 + $0x190] sm:$0xff]  ;;  %2602 = vmatprep.subr.mxu1 %v2734_v60 }
 0x4d4   : > { %2608 = vmatprep.mubr.msk.f32.mxu1 %vm2735_vm0, %v2734_v60  ;;  %2603 = vmatpush3.msra.mxu1 %v1862_v10 }
 0x4d5   : > { %2604 = vmatprep.subr.mxu1 %v2734_v60 }
 0x4d6   : > { %2605 = vmatpush3.msra.mxu1 %v1861_v49 }
 0x4d7   : > { %2606 = vmatprep.subr.mxu1 %v2734_v60 }
 0x577   : > { %v3155_v50 = vpop.f32.mrf.mxu1 }
 0x578   : > { %v1213_v2 = vadd.f32 %v3155_v50, %v1859_v32 }
 0x579   : > { %v3157_v51 = vpop.f32.mrf.mxu1 }
 0x57a   : > { %v1208_v5 = vadd.f32 %v1859_v32, %v3157_v51  ;;  %v1287_v8 = vmul.f32 0.01, %v1213_v2 }
 0x57b   : > { %v2522_v52 = vpop.f32.mrf.mxu1 }
 0x57c   : > { %v1223_v48 = vadd.f32 %v2522_v52, %v1859_v32  ;;  %v1286_v10 = vmul.f32 0.01, %v1208_v5  ;;  %v1303_v50 = vmax.f32 %v1213_v2, %v1287_v8  ;;  %v1318_v52 = vld [vmem:[%s251_s23] sm:$0x1]  ;;  %v1914_v2 = vld [vmem:[%s3409_s3 + $0x330] sm:$0xff] }
 0x57d   : > { %v3159_v53 = vpop.f32.mrf.mxu1 }
 0x57e   : > { %v1218_v63 = vadd.f32 %v1859_v32, %v3159_v53  ;;  %v1289_v3 = vmul.f32 0.01, %v1223_v48  ;;  %v1302_v51 = vmax.f32 %v1208_v5, %v1286_v10  ;;  %v1860_v53 = vld [vmem:[%s3409_s3 + $0x180] sm:$0xff] }
 0x57f   : > { %v2525_v54 = vpop.f32.mrf.mxu1  ;;  %2607 = vmatpush3.msra.mxu1 %v1860_v53  ;;  %v1496_v5 = vld [vmem:[%s3410_s4 + $0x4] sm:$0x1]  ;;  %v1586_v53 = vld [vmem:[%s3410_s4 + $0x5] sm:$0x1] }
 0x580   : > { %v1233_v43 = vadd.f32 %v2525_v54, %v1859_v32  ;;  %v1288_v6 = vmul.f32 0.01, %v1218_v63  ;;  %v1305_v9 = vmax.f32 %v1223_v48, %v1289_v3  ;;  %2646 = vmatprep.subr.mxu1 %v2734_v60  ;;  %v1891_v54 = vld [vmem:[%s3409_s3 + $0x278] sm:$0xff]  ;;  %v1920_v48 = vld [vmem:[%s3409_s3 + $0x360] sm:$0xff]  ;;  %v1913_v3 = vld [vmem:[%s3409_s3 + $0x328] sm:$0xff] }
 0x581   : > { %v1227_v55 = vpop.f32.mrf.mxu1 }
 0x582   : > { %v1228_v45 = vadd.f32 %v1859_v32, %v1227_v55  ;;  %v1291_v61 = vmul.f32 0.01, %v1233_v43  ;;  %v1304_v49 = vmax.f32 %v1218_v63, %v1288_v6  ;;  %v1890_v55 = vld [vmem:[%s3409_s3 + $0x270] sm:$0xff]  ;;  %v1917_v63 = vld [vmem:[%s3409_s3 + $0x348] sm:$0xff] }
 0x583   : > { %v2528_v56 = vpop.f32.mrf.mxu1 }
 0x584   : > { %v1243_v37 = vadd.f32 %v2528_v56, %v1859_v32  ;;  %v1290_v0 = vmul.f32 0.01, %v1228_v45  ;;  %v1307_v4 = vmax.f32 %v1233_v43, %v1291_v61  ;;  %v1889_v56 = vld [vmem:[%s3409_s3 + $0x268] sm:$0xff]  ;;  %v1894_v43 = vld [vmem:[%s3409_s3 + $0x290] sm:$0xff]  ;;  %v1919_v61 = vld [vmem:[%s3409_s3 + $0x358] sm:$0xff] }
 0x585   : > { %v1237_v57 = vpop.f32.mrf.mxu1 }
 0x586   : > { %v1238_v40 = vadd.f32 %v1859_v32, %v1237_v57  ;;  %v1293_v17 = vmul.f32 0.01, %v1243_v37  ;;  %v1306_v7 = vmax.f32 %v1228_v45, %v1290_v0  ;;  %v1888_v57 = vld [vmem:[%s3409_s3 + $0x260] sm:$0xff]  ;;  %v1923_v45 = vld [vmem:[%s3409_s3 + $0x378] sm:$0xff] }
 0x587   : > { %v2531_v58 = vpop.f32.mrf.mxu1  ;;  %v1916_v0 = vld [vmem:[%s3409_s3 + $0x340] sm:$0xff] }
 0x588   : > { %v1253_v31 = vadd.f32 %v2531_v58, %v1859_v32  ;;  %v1292_v46 = vmul.f32 0.01, %v1238_v40  ;;  %v1309_v62 = vmax.f32 %v1243_v37, %v1293_v17  ;;  %v1887_v58 = vld [vmem:[%s3409_s3 + $0x258] sm:$0xff]  ;;  %v1893_v17 = vld [vmem:[%s3409_s3 + $0x288] sm:$0xff] }
 0x589   : > { %v1247_v59 = vpop.f32.mrf.mxu1 }
 0x58a   : > { %v1248_v35 = vadd.f32 %v1859_v32, %v1247_v59  ;;  %v1295_v38 = vmul.f32 0.01, %v1253_v31  ;;  %v1308_v1 = vmax.f32 %v1238_v40, %v1292_v46  ;;  %v1886_v59 = vld [vmem:[%s3409_s3 + $0x250] sm:$0xff] }
 0x58b   : > { %v2534_v11 = vpop.f32.mrf.mxu1  ;;  %v1922_v46 = vld [vmem:[%s3409_s3 + $0x370] sm:$0xff] }
 0x58c   : > { %v1263_v24 = vadd.f32 %v2534_v11, %v1859_v32  ;;  %v1294_v41 = vmul.f32 0.01, %v1248_v35  ;;  %v1311_v44 = vmax.f32 %v1253_v31, %v1295_v38  ;;  %v1885_v11 = vld [vmem:[%s3409_s3 + $0x248] sm:$0xff]  ;;  %v1900_v31 = vld [vmem:[%s3409_s3 + $0x2c0] sm:$0xff] }
 0x58d   : > { %v1257_v12 = vpop.f32.mrf.mxu1 }
 0x58e   : > { %v1258_v28 = vadd.f32 %v1859_v32, %v1257_v12  ;;  %v1297_v33 = vmul.f32 0.01, %v1263_v24  ;;  %v1310_v47 = vmax.f32 %v1248_v35, %v1294_v41  ;;  %v1884_v12 = vld [vmem:[%s3409_s3 + $0x240] sm:$0xff]  ;;  %v1897_v35 = vld [vmem:[%s3409_s3 + $0x2a8] sm:$0xff] }
 0x58f   : > { %v2537_v13 = vpop.f32.mrf.mxu1 }
 0x590   : > { %v1273_v18 = vadd.f32 %v2537_v13, %v1859_v32  ;;  %v1296_v36 = vmul.f32 0.01, %v1258_v28  ;;  %v1313_v39 = vmax.f32 %v1263_v24, %v1297_v33  ;;  %v1883_v13 = vld [vmem:[%s3409_s3 + $0x238] sm:$0xff] }
 0x591   : > { %v1267_v14 = vpop.f32.mrf.mxu1  ;;  %v1907_v24 = vld [vmem:[%s3409_s3 + $0x2f8] sm:$0xff] }
 0x592   : > { %v1268_v21 = vadd.f32 %v1859_v32, %v1267_v14  ;;  %v1299_v25 = vmul.f32 0.01, %v1273_v18  ;;  %v1312_v42 = vmax.f32 %v1258_v28, %v1296_v36  ;;  %v1882_v14 = vld [vmem:[%s3409_s3 + $0x230] sm:$0xff]  ;;  %v1903_v28 = vld [vmem:[%s3409_s3 + $0x2d8] sm:$0xff]  ;;  %v1896_v36 = vld [vmem:[%s3409_s3 + $0x2a0] sm:$0xff] }
 0x593   : > { %v2540_v15 = vpop.f32.mrf.mxu1  ;;  %v1899_v33 = vld [vmem:[%s3409_s3 + $0x2b8] sm:$0xff] }
 0x594   : > { %v1283_v19 = vadd.f32 %v2540_v15, %v1859_v32  ;;  %v1298_v29 = vmul.f32 0.01, %v1268_v21  ;;  %v1315_v34 = vmax.f32 %v1273_v18, %v1299_v25  ;;  %v1880_v15 = vld [vmem:[%s3409_s3 + $0x220] sm:$0xff]  ;;  %v1906_v25 = vld [vmem:[%s3409_s3 + $0x2f0] sm:$0xff] }
 0x595   : > { %v1277_v20 = vpop.f32.mrf.mxu1 }
 0x596   : > { %v1301_v22 = vmul.f32 0.01, %v1283_v19  ;;  %v1278_v23 = vadd.f32 %v1859_v32, %v1277_v20  ;;  %v1314_v16 = vmax.f32 %v1268_v21, %v1298_v29  ;;  %v1881_v32 = vld [vmem:[%s3409_s3 + $0x228] sm:$0xff]  ;;  %v1879_v20 = vld [vmem:[%s3409_s3 + $0x218] sm:$0xff]  ;;  %v1878_v21 = vld [vmem:[%s3409_s3 + $0x210] sm:$0xff] }
 0x597   : > { %v1902_v29 = vld [vmem:[%s3409_s3 + $0x2d0] sm:$0xff] }
 0x598   : > { %v1317_v26 = vmax.f32 %v1283_v19, %v1301_v22  ;;  %v1300_v27 = vmul.f32 0.01, %v1278_v23  ;;  %v1877_v22 = vld [vmem:[%s3409_s3 + $0x208] sm:$0xff] }
 0x59a   : > { %v1316_v30 = vmax.f32 %v1278_v23, %v1300_v27  ;;  %2542 = vmatpush3.msra.mxu0 %v1317_v26  ;;  %v1876_v23 = vld [vmem:[%s3409_s3 + $0x200] sm:$0xff]  ;;  %v1905_v26 = vld [vmem:[%s3409_s3 + $0x2e8] sm:$0xff] }
 0x59b   : > { %2543 = vmatprep.subr.mxu0 %v2734_v60  ;;  %v1904_v27 = vld [vmem:[%s3409_s3 + $0x2e0] sm:$0xff] }
 0x59c   : > { %2544 = vmatpush3.msra.mxu0 %v1316_v30  ;;  %v1901_v30 = vld [vmem:[%s3409_s3 + $0x2c8] sm:$0xff] }
 0x59d   : > { %2545 = vmatprep.subr.mxu0 %v2734_v60 }
 0x59e   : > { %2546 = vmatpush3.msra.mxu0 %v1315_v34  ;;  %v1898_v34 = vld [vmem:[%s3409_s3 + $0x2b0] sm:$0xff] }
 0x59f   : > { %2547 = vmatprep.subr.mxu0 %v2734_v60 }
 0x5a0   : > { %2548 = vmatpush3.msra.mxu0 %v1314_v16  ;;  %v1406_v16 = vld [vmem:[%s3410_s4 + $0x3] sm:$0x1] }
 0x5a1   : > { %2549 = vmatprep.subr.mxu0 %v2734_v60 }
 0x5a2   : > { %2550 = vmatpush3.msra.mxu0 %v1313_v39 }
 0x5a3   : > { %2551 = vmatprep.subr.mxu0 %v2734_v60 }
 0x5a4   : > { %2552 = vmatpush3.msra.mxu0 %v1312_v42  ;;  %v1895_v42 = vld [vmem:[%s3409_s3 + $0x298] sm:$0xff] }
 0x5a5   : > { %2553 = vmatprep.subr.mxu0 %v2734_v60 }
 0x5a6   : > { %2554 = vmatpush3.msra.mxu0 %v1311_v44  ;;  %v1892_v44 = vld [vmem:[%s3409_s3 + $0x280] sm:$0xff] }
 0x5a7   : > { %2555 = vmatprep.subr.mxu0 %v2734_v60 }
 0x5a8   : > { %2556 = vmatpush3.msra.mxu0 %v1310_v47  ;;  %v1921_v47 = vld [vmem:[%s3409_s3 + $0x368] sm:$0xff] }
 0x5a9   : > { %2557 = vmatprep.subr.mxu0 %v2734_v60 }
 0x5aa   : > { %2558 = vmatpush3.msra.mxu0 %v1309_v62  ;;  %v1918_v62 = vld [vmem:[%s3409_s3 + $0x350] sm:$0xff] }
 0x5ab   : > { %2559 = vmatprep.subr.mxu0 %v2734_v60 }
 0x5ac   : > { %2560 = vmatpush3.msra.mxu0 %v1308_v1  ;;  %v1915_v1 = vld [vmem:[%s3409_s3 + $0x338] sm:$0xff] }
 0x5ad   : > { %2561 = vmatprep.subr.mxu0 %v2734_v60 }
 0x5ae   : > { %2562 = vmatpush3.msra.mxu0 %v1307_v4  ;;  %v1912_v4 = vld [vmem:[%s3409_s3 + $0x320] sm:$0xff] }
 0x5af   : > { %2563 = vmatprep.subr.mxu0 %v2734_v60 }
 0x5b0   : > { %2564 = vmatpush3.msra.mxu0 %v1306_v7 }
 0x5b1   : > { %2565 = vmatprep.subr.mxu0 %v2734_v60 }
 0x5b2   : > { %2566 = vmatpush3.msra.mxu0 %v1305_v9 }
 0x5b3   : > { %2567 = vmatprep.subr.mxu0 %v2734_v60 }
 0x5b4   : > { %2568 = vmatpush3.msra.mxu0 %v1304_v49  ;;  %v1911_v49 = vld [vmem:[%s3409_s3 + $0x318] sm:$0xff] }
 0x5b5   : > { %2569 = vmatprep.subr.mxu0 %v2734_v60 }
 0x5b6   : > { %2570 = vmatpush3.msra.mxu0 %v1303_v50  ;;  %v1910_v50 = vld [vmem:[%s3409_s3 + $0x310] sm:$0xff] }
 0x5b7   : > { %2571 = vmatprep.subr.mxu0 %v2734_v60 }
 0x5b8   : > { %2572 = vmatpush3.msra.mxu0 %v1302_v51  ;;  %v1909_v51 = vld [vmem:[%s3409_s3 + $0x308] sm:$0xff] }
 0x5b9   : > { %2574 = vmatmul.mubr.f32.vlgmr.msra.gmra.mxu0 %v1318_v52  ;;  %2611 = vmatprep.subr.mxu0 %v2734_v60  ;;  %v1908_v52 = vld [vmem:[%s3409_s3 + $0x300] sm:$0xff] }
 0x5ba   : > { %2643 = vmatprep.mubr.msk.f32.mxu0 %vm2735_vm0, %v2734_v60  ;;  %2612 = vmatpush3.msra.mxu0 %v1891_v54 }
 0x5bb   : > { %2613 = vmatprep.subr.mxu0 %v2734_v60 }
 0x5bc   : > { %2614 = vmatpush3.msra.mxu0 %v1890_v55 }
 0x5bd   : > { %2615 = vmatprep.subr.mxu0 %v2734_v60 }
 0x5be   : > { %2616 = vmatpush3.msra.mxu0 %v1889_v56 }
 0x5bf   : > { %2617 = vmatprep.subr.mxu0 %v2734_v60 }
 0x5c0   : > { %2618 = vmatpush3.msra.mxu0 %v1888_v57 }
 0x5c1   : > { %2619 = vmatprep.subr.mxu0 %v2734_v60 }
 0x5c2   : > { %2620 = vmatpush3.msra.mxu0 %v1887_v58 }
 0x5c3   : > { %2621 = vmatprep.subr.mxu0 %v2734_v60 }
 0x5c4   : > { %2622 = vmatpush3.msra.mxu0 %v1886_v59  ;;  %v1676_v59 = vld [vmem:[%s3410_s4 + $0x6] sm:$0x1] }
 0x5c5   : > { %2623 = vmatprep.subr.mxu0 %v2734_v60 }
 0x5c6   : > { %2624 = vmatpush3.msra.mxu0 %v1885_v11 }
 0x5c7   : > { %2625 = vmatprep.subr.mxu0 %v2734_v60 }
 0x5c8   : > { %2626 = vmatpush3.msra.mxu0 %v1884_v12 }
 0x5c9   : > { %2627 = vmatprep.subr.mxu0 %v2734_v60 }
 0x5ca   : > { %2628 = vmatpush3.msra.mxu0 %v1883_v13 }
 0x5cb   : > { %2629 = vmatprep.subr.mxu0 %v2734_v60 }
 0x5cc   : > { %2630 = vmatpush3.msra.mxu0 %v1882_v14 }
 0x5cd   : > { %2631 = vmatprep.subr.mxu0 %v2734_v60 }
 0x5ce   : > { %2632 = vmatpush3.msra.mxu0 %v1881_v32 }
 0x5cf   : > { %2633 = vmatprep.subr.mxu0 %v2734_v60 }
 0x5d0   : > { %2634 = vmatpush3.msra.mxu0 %v1880_v15 }
 0x5d1   : > { %2635 = vmatprep.subr.mxu0 %v2734_v60 }
 0x5d2   : > { %2636 = vmatpush3.msra.mxu0 %v1879_v20 }
 0x5d3   : > { %2637 = vmatprep.subr.mxu0 %v2734_v60 }
 0x5d4   : > { %2638 = vmatpush3.msra.mxu0 %v1878_v21 }
 0x5d5   : > { %2639 = vmatprep.subr.mxu0 %v2734_v60 }
 0x5d6   : > { %2640 = vmatpush3.msra.mxu0 %v1877_v22 }
 0x5d7   : > { %2641 = vmatprep.subr.mxu0 %v2734_v60 }
 0x5d8   : > { %2642 = vmatpush3.msra.mxu0 %v1876_v23 }
 0x5d9   : > { %2681 = vmatprep.subr.mxu0 %v2734_v60 }
 0x679   : > { %v1385_v18 = vpop.f32.mrf.mxu0 }
 0x67a   : > { %2609 = vmatmul.mubr.f32.vlgmr.msra.gmra.mxu1 %v1385_v18 }
 0x67b   : > { %v2575_v19 = vpop.f32.mrf.mxu0  ;;  %2678 = vmatprep.mubr.msk.f32.mxu1 %vm2735_vm0, %v2734_v60  ;;  %2647 = vmatpush3.msra.mxu1 %v1907_v24 }
 0x67c   : > { %2648 = vmatprep.subr.mxu1 %v2734_v60 }
 0x67d   : > { %2649 = vmatpush3.msra.mxu1 %v1906_v25 }
 0x67e   : > { %2650 = vmatprep.subr.mxu1 %v2734_v60 }
 0x67f   : > { %2651 = vmatpush3.msra.mxu1 %v1905_v26 }
 0x680   : > { %2652 = vmatprep.subr.mxu1 %v2734_v60 }
 0x681   : > { %2653 = vmatpush3.msra.mxu1 %v1904_v27 }
 0x682   : > { %2654 = vmatprep.subr.mxu1 %v2734_v60 }
 0x683   : > { %2655 = vmatpush3.msra.mxu1 %v1903_v28 }
 0x684   : > { %2656 = vmatprep.subr.mxu1 %v2734_v60 }
 0x685   : > { %2657 = vmatpush3.msra.mxu1 %v1902_v29 }
 0x686   : > { %2658 = vmatprep.subr.mxu1 %v2734_v60 }
 0x687   : > { %2659 = vmatpush3.msra.mxu1 %v1901_v30 }
 0x688   : > { %2660 = vmatprep.subr.mxu1 %v2734_v60 }
 0x689   : > { %2661 = vmatpush3.msra.mxu1 %v1900_v31 }
 0x68a   : > { %2662 = vmatprep.subr.mxu1 %v2734_v60 }
 0x68b   : > { %2663 = vmatpush3.msra.mxu1 %v1899_v33 }
 0x68c   : > { %2664 = vmatprep.subr.mxu1 %v2734_v60 }
 0x68d   : > { %2665 = vmatpush3.msra.mxu1 %v1898_v34 }
 0x68e   : > { %2666 = vmatprep.subr.mxu1 %v2734_v60 }
 0x68f   : > { %2667 = vmatpush3.msra.mxu1 %v1897_v35 }
 0x690   : > { %2668 = vmatprep.subr.mxu1 %v2734_v60 }
 0x691   : > { %2669 = vmatpush3.msra.mxu1 %v1896_v36 }
 0x692   : > { %2670 = vmatprep.subr.mxu1 %v2734_v60 }
 0x693   : > { %2671 = vmatpush3.msra.mxu1 %v1895_v42 }
 0x694   : > { %2672 = vmatprep.subr.mxu1 %v2734_v60 }
 0x695   : > { %2673 = vmatpush3.msra.mxu1 %v1894_v43 }
 0x696   : > { %2674 = vmatprep.subr.mxu1 %v2734_v60 }
 0x697   : > { %2675 = vmatpush3.msra.mxu1 %v1893_v17 }
 0x698   : > { %2676 = vmatprep.subr.mxu1 %v2734_v60 }
 0x699   : > { %2677 = vmatpush3.msra.mxu1 %v1892_v44 }
 0x73a   : > { %v1473_v37 = vpop.f32.mrf.mxu1 }
 0x73b   : > { %v1474_v38 = vadd.f32 %v1473_v37, %v1406_v16 }
 0x73c   : > { %v2610_v39 = vpop.f32.mrf.mxu1 }
 0x73d   : > { %v1477_v40 = vmul.f32 0.01, %v1474_v38 }
 0x73f   : > { %v1478_v41 = vmax.f32 %v1474_v38, %v1477_v40 }
 0x741   : > { %2644 = vmatmul.mubr.f32.vlgmr.msra.gmra.mxu0 %v1478_v41 }
 0x742   : > { %2713 = vmatprep.mubr.msk.f32.mxu0 %vm2735_vm0, %v2734_v60  ;;  %2682 = vmatpush3.msra.mxu0 %v1923_v45 }
 0x743   : > { %2683 = vmatprep.subr.mxu0 %v2734_v60 }
 0x744   : > { %2684 = vmatpush3.msra.mxu0 %v1922_v46 }
 0x745   : > { %2685 = vmatprep.subr.mxu0 %v2734_v60 }
 0x746   : > { %2686 = vmatpush3.msra.mxu0 %v1921_v47 }
 0x747   : > { %2687 = vmatprep.subr.mxu0 %v2734_v60 }
 0x748   : > { %2688 = vmatpush3.msra.mxu0 %v1920_v48 }
 0x749   : > { %2689 = vmatprep.subr.mxu0 %v2734_v60 }
 0x74a   : > { %2690 = vmatpush3.msra.mxu0 %v1919_v61 }
 0x74b   : > { %2691 = vmatprep.subr.mxu0 %v2734_v60 }
 0x74c   : > { %2692 = vmatpush3.msra.mxu0 %v1918_v62 }
 0x74d   : > { %2693 = vmatprep.subr.mxu0 %v2734_v60 }
 0x74e   : > { %2694 = vmatpush3.msra.mxu0 %v1917_v63 }
 0x74f   : > { %2695 = vmatprep.subr.mxu0 %v2734_v60 }
 0x750   : > { %2696 = vmatpush3.msra.mxu0 %v1916_v0 }
 0x751   : > { %2697 = vmatprep.subr.mxu0 %v2734_v60 }
 0x752   : > { %2698 = vmatpush3.msra.mxu0 %v1915_v1 }
 0x753   : > { %2699 = vmatprep.subr.mxu0 %v2734_v60 }
 0x754   : > { %2700 = vmatpush3.msra.mxu0 %v1914_v2 }
 0x755   : > { %2701 = vmatprep.subr.mxu0 %v2734_v60 }
 0x756   : > { %2702 = vmatpush3.msra.mxu0 %v1913_v3 }
 0x757   : > { %2703 = vmatprep.subr.mxu0 %v2734_v60 }
 0x758   : > { %2704 = vmatpush3.msra.mxu0 %v1912_v4 }
 0x759   : > { %2705 = vmatprep.subr.mxu0 %v2734_v60 }
 0x75a   : > { %2706 = vmatpush3.msra.mxu0 %v1911_v49 }
 0x75b   : > { %2707 = vmatprep.subr.mxu0 %v2734_v60 }
 0x75c   : > { %2708 = vmatpush3.msra.mxu0 %v1910_v50 }
 0x75d   : > { %2709 = vmatprep.subr.mxu0 %v2734_v60 }
 0x75e   : > { %2710 = vmatpush3.msra.mxu0 %v1909_v51 }
 0x75f   : > { %2711 = vmatprep.subr.mxu0 %v2734_v60 }
 0x760   : > { %2712 = vmatpush3.msra.mxu0 %v1908_v52 }
 0x801   : > { %v1563_v6 = vpop.f32.mrf.mxu0 }
 0x802   : > { %v1564_v7 = vadd.f32 %v1563_v6, %v1496_v5 }
 0x803   : > { %v2645_v8 = vpop.f32.mrf.mxu0 }
 0x804   : > { %v1567_v9 = vmul.f32 0.01, %v1564_v7 }
 0x806   : > { %v1568_v10 = vmax.f32 %v1564_v7, %v1567_v9 }
 0x808   : > { %2679 = vmatmul.mubr.f32.vlgmr.msra.gmra.mxu1 %v1568_v10 }
 0x8c8   : > { %v1653_v54 = vpop.f32.mrf.mxu1 }
 0x8c9   : > { %v1654_v55 = vadd.f32 %v1653_v54, %v1586_v53 }
 0x8ca   : > { %v2680_v56 = vpop.f32.mrf.mxu1 }
 0x8cb   : > { %v1657_v57 = vmul.f32 0.01, %v1654_v55 }
 0x8cd   : > { %v1658_v58 = vmax.f32 %v1654_v55, %v1657_v57 }
 0x8cf   : > { %2714 = vmatmul.mubr.f32.vlgmr.msra.gmra.mxu0 %v1658_v58 }
 0x98f   : > { %v1743_v60 = vpop.f32.mrf.mxu0 }
 0x990   : > { %v1744_v11 = vadd.f32 %v1743_v60, %v1676_v59 }
 0x991   : > { %v2715_v12 = vpop.f32.mrf.mxu0 }
 0x992   : > { %1747 = vst [vmem:[%s254_s17] sm:$0x1] %v1744_v11 }
 0x993 PF: > { %s15_s18 = sadd.s32 1, %s2732_s18  }
 0x994   : > { %p12_p4 = scmp.ge.s32.totalorder %s15_s18, 4  }
 0x996   :  { %14 = sbr.rel (!%p12_p4) target bundleno = 1 (0x1), region = 82 }

</bundles_post_ra>
